<compile_context>
chip_gen: v5e
topology: v5e:2x2
jax: 0.10.0
libtpu: 0.0.40
codegen_flags: <defaults>
</compile_context>

<pallas_src>
import functools

import jax
import jax.numpy as jnp
from jax import lax
from jax.experimental import pallas as pl
from jax.experimental.pallas import tpu as pltpu

VOCAB_SIZE = 4901
VOCAB_TILE = 512   # logits vocab tile (multiple of 128); fits VMEM easily


# ----------------------------------------------------------------------------
# Kernel 1: fused input-gemm + visual gate bias + LSTM recurrence
#   (PyTorch gate order i, f, g, o).  Single invocation; weights and the full
#   gate tensor are VMEM-resident; only the (B,H)x(H,4H) recurrent matmul and
#   the pointwise gate math sit on the serial path.
# ----------------------------------------------------------------------------
def _lstm_fused_kernel(emb_ref, vis_ref, wv_ref, bv_ref, wie_ref, wiv_ref,
                       b_ref, h0_ref, whh_ref, out_ref, g_scr):
    T = emb_ref.shape[0]
    H = h0_ref.shape[1]

    # Time-invariant gate contribution: ReLU(vis @ Wv + bv) @ W_ih_vis + bias.
    proj_vis = jnp.maximum(
        jnp.dot(vis_ref[...], wv_ref[...], preferred_element_type=jnp.float32)
        + bv_ref[...], 0.0)                                        # (B, S)
    base = (jnp.dot(proj_vis, wiv_ref[...],
                    preferred_element_type=jnp.float32)
            + b_ref[...])                                          # (B, 4H)

    # Bulk input matmuls for all timesteps, off the serial path (independent
    # of h); results parked in VMEM scratch (never hits HBM).
    wie = wie_ref[...]
    for t in range(T):
        g_scr[t] = jnp.dot(emb_ref[t], wie,
                           preferred_element_type=jnp.float32)     # (B, 4H)

    whh = whh_ref[...]                                             # (H, 4H)
    h = h0_ref[...].astype(jnp.float32)                            # (B, H)
    c = jnp.zeros_like(h)

    def sigmoid(x):                       # exp lands on EUP; explicit & safe
        return 1.0 / (1.0 + jnp.exp(-x))

    # T is small and static -> straight-line (fully unrolled) recurrence.
    # TODO(synk): for long max_tgt_length switch to lax.fori_loop(unroll=k)
    #             and a grid/pipelined gate load to bound VMEM usage.
    for t in range(T):
        gates = (g_scr[t] + base
                 + jnp.dot(h, whh, preferred_element_type=jnp.float32))
        i_g = sigmoid(gates[:, 0 * H:1 * H])
        f_g = sigmoid(gates[:, 1 * H:2 * H])
        g_g = jnp.tanh(gates[:, 2 * H:3 * H])
        o_g = sigmoid(gates[:, 3 * H:4 * H])
        c = f_g * c + i_g * g_g
        h = o_g * jnp.tanh(c)
        out_ref[t] = h.astype(out_ref.dtype)


def lstm_forward(emb_tm, vis, wv, bv, w_ih_emb, w_ih_vis, b_lstm, h0, w_hh):
    """emb_tm: (T,B,E) time-major embeddings -> hiddens (T,B,H)."""
    T, B, _ = emb_tm.shape
    H = h0.shape[1]
    return pl.pallas_call(
        _lstm_fused_kernel,
        out_shape=jax.ShapeDtypeStruct((T, B, H), jnp.float32),
        scratch_shapes=[pltpu.VMEM((T, B, 4 * H), jnp.float32)],
    )(emb_tm, vis, wv, bv.reshape(1, -1), w_ih_emb, w_ih_vis,
      b_lstm.reshape(1, -1), h0, w_hh)


# ----------------------------------------------------------------------------
# Kernel 2: output projection.  Activations (M,H) stay VMEM-resident across
# the whole grid; W_out is streamed exactly once (vocab tiles); the last
# vocab tile is a masked partial write directly into the unpadded logits.
# ----------------------------------------------------------------------------
def _logits_kernel(x_ref, w_ref, b_ref, out_ref):
    out_ref[...] = (
        jnp.dot(x_ref[...], w_ref[...], preferred_element_type=jnp.float32)
        + b_ref[...]).astype(out_ref.dtype)


def to_logits(x, w_p, b_p, *, tn=VOCAB_TILE):
    """x: (M, H), w_p: (H, Vpad) pre-padded, b_p: (Vpad,) -> (M, VOCAB_SIZE)."""
    M, H = x.shape
    Vp = w_p.shape[1]
    tn = min(tn, Vp)
    assert Vp % tn == 0, "pad w_out/b_out to a multiple of the vocab tile"
    if x.dtype != w_p.dtype:        # allows bf16 weight streaming if desired
        x = x.astype(w_p.dtype)

    return pl.pallas_call(
        _logits_kernel,
        out_shape=jax.ShapeDtypeStruct((M, VOCAB_SIZE), jnp.float32),
        grid_spec=pltpu.PrefetchScalarGridSpec(
            num_scalar_prefetch=0,
            grid=(Vp // tn,),                          # vocab tiles only
            in_specs=[
                pl.BlockSpec((M, H), lambda j: (0, 0)),    # resident rows
                pl.BlockSpec((H, tn), lambda j: (0, j)),   # streamed once
                pl.BlockSpec((1, tn), lambda j: (0, j)),
            ],
            out_specs=pl.BlockSpec((M, tn), lambda j: (0, j)),
        ),
        compiler_params=pltpu.CompilerParams(
            dimension_semantics=("parallel",)),
    )(x, w_p, b_p.reshape(1, Vp))


# ----------------------------------------------------------------------------
# Parameters (output projection padded to the vocab tile here, once)
# ----------------------------------------------------------------------------
def make_params(key, *, embed_dim, visual_dim, scale_to, hidden_dim,
                pad_token, logits_dtype=jnp.float32):
    ks = jax.random.split(key, 9)
    scale = 0.02
    E, S, H = embed_dim, scale_to, hidden_dim

    embedding = jax.random.normal(ks[0], (VOCAB_SIZE, E), jnp.float32) * scale
    embedding = embedding.at[pad_token].set(0.0)   # nn.Embedding(padding_idx)

    # PyTorch stores weight_ih_l0 as (4H, E+S); we keep the transposed layout
    # (E+S, 4H) and split it into embedding / visual halves (LSTM input is
    # concat([embedding, proj_visual], -1)).
    w_ih = jax.random.normal(ks[3], (E + S, 4 * H), jnp.float32) * scale

    vocab_pad = pl.cdiv(VOCAB_SIZE, VOCAB_TILE) * VOCAB_TILE
    w_out = jax.random.normal(ks[6], (H, VOCAB_SIZE), jnp.float32) * scale
    b_out = jax.random.normal(ks[7], (VOCAB_SIZE,), jnp.float32) * scale

    return {
        "embedding": embedding,
        "wv": jax.random.normal(ks[1], (visual_dim, S), jnp.float32) * scale,
        "bv": jax.random.normal(ks[2], (S,), jnp.float32) * scale,
        "w_ih_emb": w_ih[:E],
        "w_ih_vis": w_ih[E:],
        "w_hh": jax.random.normal(ks[4], (H, 4 * H), jnp.float32) * scale,
        "b_ih": jax.random.normal(ks[5], (4 * H,), jnp.float32) * scale,
        "b_hh": jax.random.normal(ks[8], (4 * H,), jnp.float32) * scale,
        # padded once here, not inside the jitted forward
        "w_out_p": jnp.pad(w_out, ((0, 0), (0, vocab_pad - VOCAB_SIZE))
                           ).astype(logits_dtype),
        "b_out_p": jnp.pad(b_out, (0, vocab_pad - VOCAB_SIZE)),
    }


# ----------------------------------------------------------------------------
# QGenSeq2Seq.forward (teacher-forcing path)
# ----------------------------------------------------------------------------
@functools.partial(jax.jit, static_argnames=("max_tgt_length",))
def qgen_forward(params, src_q, encoder_hidden, visual_features, *,
                 max_tgt_length):
    B = encoder_hidden.shape[0]
    H = encoder_hidden.shape[-1]
    T = max_tgt_length

    # Embedding gather directly time-major -> no transpose of the big input.
    emb_tm = jnp.take(params["embedding"], src_q.T, axis=0)     # (T, B, E)

    b_lstm = params["b_ih"] + params["b_hh"]
    h0 = encoder_hidden[:, 0, :]                                # (B, H), c0=0
    hiddens_tm = lstm_forward(emb_tm, visual_features, params["wv"],
                              params["bv"], params["w_ih_emb"],
                              params["w_ih_vis"], b_lstm, h0,
                              params["w_hh"])                   # (T, B, H)

    # Only the small (T,B,H) hidden tensor gets transposed.
    hiddens = jnp.transpose(hiddens_tm, (1, 0, 2)).reshape(B * T, H)
    logits = to_logits(hiddens, params["w_out_p"], params["b_out_p"])
    return logits.reshape(B, T, VOCAB_SIZE)


# ----------------------------------------------------------------------------
# Pure-JAX reference of the PyTorch forward() (for correctness check)
# ----------------------------------------------------------------------------
def reference_forward(params, src_q, encoder_hidden, visual_features, T):
    HIGH = jax.lax.Precision.HIGHEST
    B = src_q.shape[0]
    H = params["w_hh"].shape[0]
    emb = params["embedding"][src_q]                                   # (B,T,E)
    pv = jax.nn.relu(jnp.dot(visual_features, params["wv"], precision=HIGH)
                     + params["bv"])                                   # (B,S)
    pv_rep = jnp.broadcast_to(pv[:, None, :], (B, T, pv.shape[-1]))
    x = jnp.concatenate([emb, pv_rep], axis=2)                         # (B,T,F)
    w_ih = jnp.concatenate([params["w_ih_emb"], params["w_ih_vis"]], axis=0)
    bias = params["b_ih"] + params["b_hh"]

    def step(carry, x_t):
        h, c = carry
        gates = (jnp.dot(x_t, w_ih, precision=HIGH)
                 + jnp.dot(h, params["w_hh"], precision=HIGH) + bias)
        i_g = jax.nn.sigmoid(gates[:, 0 * H:1 * H])
        f_g = jax.nn.sigmoid(gates[:, 1 * H:2 * H])
        g_g = jnp.tanh(gates[:, 2 * H:3 * H])
        o_g = jax.nn.sigmoid(gates[:, 3 * H:4 * H])
        c = f_g * c + i_g * g_g
        h = o_g * jnp.tanh(c)
        return (h, c), h

    h0 = encoder_hidden[:, 0, :]
    (_, _), hs = lax.scan(step, (h0, jnp.zeros_like(h0)),
                          jnp.transpose(x, (1, 0, 2)))
    hiddens = jnp.transpose(hs, (1, 0, 2)).reshape(B * T, H)
    w_out = params["w_out_p"][:, :VOCAB_SIZE].astype(jnp.float32)
    b_out = params["b_out_p"][:VOCAB_SIZE]
    logits = jnp.dot(hiddens, w_out, precision=HIGH) + b_out
    return logits.reshape(B, T, VOCAB_SIZE)


if __name__ == "__main__":
    # Small deterministic config consistent with the module's __init__.
    B, T = 2, 8      # batch, max_tgt_length
    E = 32           # word_embedding_dim
    VF = 64          # visual_features_dim
    S = 16           # scale_visual_to
    H = 32           # hidden_dim (num_layers = 1, implied by encoder_hidden)
    PAD = 0
    # TODO(synk): sampling()/beam_search() (autoregressive categorical decode)
    # is not ported; only the teacher-forcing forward() path is implemented.

    key = jax.random.PRNGKey(0)
    kp, k1, k2, k3 = jax.random.split(key, 4)

    params = make_params(kp, embed_dim=E, visual_dim=VF, scale_to=S,
                         hidden_dim=H, pad_token=PAD)

    src_q = jax.random.randint(k1, (B, T), 0, VOCAB_SIZE, dtype=jnp.int32)
    encoder_hidden = jax.random.normal(k2, (B, 1, H), jnp.float32)
    visual_features = jax.random.normal(k3, (B, VF), jnp.float32)

    word_logits = qgen_forward(params, src_q, encoder_hidden, visual_features,
                               max_tgt_length=T)
    word_logits = jax.block_until_ready(word_logits)
    assert word_logits.shape == (B, T, VOCAB_SIZE)
    assert bool(jnp.all(jnp.isfinite(word_logits)))

    ref = reference_forward(params, src_q, encoder_hidden, visual_features, T)
    max_err = float(jnp.max(jnp.abs(word_logits - ref)))
    assert max_err < 2e-3, f"mismatch vs pure-JAX reference: {max_err}"
    print("KERNEL_OK")
</pallas_src>

<mosaic_0001>
module attributes {stable_mosaic.version = 11 : i64} {
  func.func @_logits_kernel(%arg0: i32, %arg1: memref<16x32xf32, #tpu.memory_space<vmem>>, %arg2: memref<32x512xf32, #tpu.memory_space<vmem>>, %arg3: memref<1x512xf32, #tpu.memory_space<vmem>>, %arg4: memref<16x512xf32, #tpu.memory_space<vmem>>) attributes {dimension_semantics = [#tpu.dimension_semantics<parallel>], iteration_bounds = array<i64: 10>, scalar_prefetch = 0 : i64, scratch_operands = 0 : i64, tpu.core_type = #tpu.core_type<tc>, window_params = [{pipeline_mode = #tpu.pipeline_mode<synchronous>, transform_indices = @transform_0, window_bounds = array<i64: 16, 32>}, {transform_indices = @transform_1, window_bounds = array<i64: 32, 512>}, {transform_indices = @transform_2, window_bounds = array<i64: 1, 512>}, {transform_indices = @transform_3, window_bounds = array<i64: 16, 512>}]} {
    %c0 = arith.constant 0 : index
    %c0_0 = arith.constant 0 : index
    %0 = vector.load %arg1[%c0, %c0_0] : memref<16x32xf32, #tpu.memory_space<vmem>>, vector<16x32xf32>
    %c0_1 = arith.constant 0 : index
    %c0_2 = arith.constant 0 : index
    %1 = vector.load %arg2[%c0_1, %c0_2] : memref<32x512xf32, #tpu.memory_space<vmem>>, vector<32x512xf32>
    %cst = arith.constant dense<0.000000e+00> : vector<16x512xf32>
    %2 = tpu.matmul %0, %1, %cst {dimension_numbers = #tpu.dot_dimension_numbers<[1], [0], [0], [1], [0, 0, 1, 1], [], []>} : vector<16x32xf32>, vector<32x512xf32>, vector<16x512xf32> -> vector<16x512xf32>
    %c0_3 = arith.constant 0 : index
    %c0_4 = arith.constant 0 : index
    %3 = vector.load %arg3[%c0_3, %c0_4] : memref<1x512xf32, #tpu.memory_space<vmem>>, vector<1x512xf32>
    %4 = vector.broadcast %3 : vector<1x512xf32> to vector<16x512xf32>
    %5 = arith.addf %2, %4 : vector<16x512xf32>
    %c0_5 = arith.constant 0 : index
    %c0_6 = arith.constant 0 : index
    %6 = vector.load %arg4[%c0_5, %c0_6] : memref<16x512xf32, #tpu.memory_space<vmem>>, vector<16x512xf32>
    tpu.vector_store %arg4[%c0_5, %c0_6], %5 {strides = array<i32>} : memref<16x512xf32, #tpu.memory_space<vmem>>, vector<16x512xf32>,
    return
  }
  func.func @transform_0(%arg0: i32) -> (i32, i32) {
    %c0_i32 = arith.constant 0 : i32
    %c0_i32_0 = arith.constant 0 : i32
    %c0_i32_1 = arith.constant 0 : i32
    return %c0_i32, %c0_i32_0 : i32, i32
  }
  func.func @transform_1(%arg0: i32) -> (i32, i32) {
    %c0_i32 = arith.constant 0 : i32
    %c0_i32_0 = arith.constant 0 : i32
    return %c0_i32, %arg0 : i32, i32
  }
  func.func @transform_2(%arg0: i32) -> (i32, i32) {
    %c0_i32 = arith.constant 0 : i32
    %c0_i32_0 = arith.constant 0 : i32
    return %c0_i32, %arg0 : i32, i32
  }
  func.func @transform_3(%arg0: i32) -> (i32, i32) {
    %c0_i32 = arith.constant 0 : i32
    %c0_i32_0 = arith.constant 0 : i32
    return %c0_i32, %arg0 : i32, i32
  }
}

module attributes {stable_mosaic.version = 11 : i64} {
  func.func @_lstm_fused_kernel(%arg0: memref<8x2x32xf32, #tpu.memory_space<vmem>>, %arg1: memref<2x64xf32, #tpu.memory_space<vmem>>, %arg2: memref<64x16xf32, #tpu.memory_space<vmem>>, %arg3: memref<1x16xf32, #tpu.memory_space<vmem>>, %arg4: memref<32x128xf32, #tpu.memory_space<vmem>>, %arg5: memref<16x128xf32, #tpu.memory_space<vmem>>, %arg6: memref<1x128xf32, #tpu.memory_space<vmem>>, %arg7: memref<2x32xf32, #tpu.memory_space<vmem>>, %arg8: memref<32x128xf32, #tpu.memory_space<vmem>>, %arg9: memref<8x2x32xf32, #tpu.memory_space<vmem>>, %arg10: memref<8x2x128xf32, #tpu.memory_space<vmem>>) attributes {dimension_semantics = [], scalar_prefetch = 0 : i64, scratch_operands = 1 : i64, tpu.core_type = #tpu.core_type<tc>} {
    %c0 = arith.constant 0 : index
    %c0_0 = arith.constant 0 : index
    %0 = vector.load %arg1[%c0, %c0_0] : memref<2x64xf32, #tpu.memory_space<vmem>>, vector<2x64xf32>
    %c0_1 = arith.constant 0 : index
    %c0_2 = arith.constant 0 : index
    %1 = vector.load %arg2[%c0_1, %c0_2] : memref<64x16xf32, #tpu.memory_space<vmem>>, vector<64x16xf32>
    %cst = arith.constant dense<0.000000e+00> : vector<2x16xf32>
    %2 = tpu.matmul %0, %1, %cst {dimension_numbers = #tpu.dot_dimension_numbers<[1], [0], [0], [1], [0, 0, 1, 1], [], []>} : vector<2x64xf32>, vector<64x16xf32>, vector<2x16xf32> -> vector<2x16xf32>
    %c0_3 = arith.constant 0 : index
    %c0_4 = arith.constant 0 : index
    %3 = vector.load %arg3[%c0_3, %c0_4] : memref<1x16xf32, #tpu.memory_space<vmem>>, vector<1x16xf32>
    %4 = vector.broadcast %3 : vector<1x16xf32> to vector<2x16xf32>
    %5 = arith.addf %2, %4 : vector<2x16xf32>
    %cst_5 = arith.constant 0.000000e+00 : f32
    %6 = vector.broadcast %cst_5 : f32 to vector<2x16xf32>
    %7 = arith.maximumf %5, %6 : vector<2x16xf32>
    %c0_6 = arith.constant 0 : index
    %c0_7 = arith.constant 0 : index
    %8 = vector.load %arg5[%c0_6, %c0_7] : memref<16x128xf32, #tpu.memory_space<vmem>>, vector<16x128xf32>
    %cst_8 = arith.constant dense<0.000000e+00> : vector<2x128xf32>
    %9 = tpu.matmul %7, %8, %cst_8 {dimension_numbers = #tpu.dot_dimension_numbers<[1], [0], [0], [1], [0, 0, 1, 1], [], []>} : vector<2x16xf32>, vector<16x128xf32>, vector<2x128xf32> -> vector<2x128xf32>
    %c0_9 = arith.constant 0 : index
    %c0_10 = arith.constant 0 : index
    %10 = vector.load %arg6[%c0_9, %c0_10] : memref<1x128xf32, #tpu.memory_space<vmem>>, vector<1x128xf32>
    %11 = vector.broadcast %10 : vector<1x128xf32> to vector<2x128xf32>
    %12 = arith.addf %9, %11 : vector<2x128xf32>
    %c0_11 = arith.constant 0 : index
    %c0_12 = arith.constant 0 : index
    %13 = vector.load %arg4[%c0_11, %c0_12] : memref<32x128xf32, #tpu.memory_space<vmem>>, vector<32x128xf32>
    %c0_13 = arith.constant 0 : index
    %c0_14 = arith.constant 0 : index
    %c0_15 = arith.constant 0 : index
    %14 = vector.load %arg0[%c0_13, %c0_14, %c0_15] : memref<8x2x32xf32, #tpu.memory_space<vmem>>, vector<1x2x32xf32>
    %15 = vector.shape_cast %14 : vector<1x2x32xf32> to vector<2x32xf32>
    %cst_16 = arith.constant dense<0.000000e+00> : vector<2x128xf32>
    %16 = tpu.matmul %15, %13, %cst_16 {dimension_numbers = #tpu.dot_dimension_numbers<[1], [0], [0], [1], [0, 0, 1, 1], [], []>} : vector<2x32xf32>, vector<32x128xf32>, vector<2x128xf32> -> vector<2x128xf32>
    %c0_17 = arith.constant 0 : index
    %c0_18 = arith.constant 0 : index
    %c0_19 = arith.constant 0 : index
    %17 = vector.load %arg10[%c0_17, %c0_18, %c0_19] : memref<8x2x128xf32, #tpu.memory_space<vmem>>, vector<1x2x128xf32>
    %18 = vector.shape_cast %17 : vector<1x2x128xf32> to vector<2x128xf32>
    %19 = vector.shape_cast %16 : vector<2x128xf32> to vector<1x2x128xf32>
    tpu.vector_store %arg10[%c0_17, %c0_18, %c0_19], %19 {strides = array<i32>} : memref<8x2x128xf32, #tpu.memory_space<vmem>>, vector<1x2x128xf32>,
    %c1 = arith.constant 1 : index
    %c0_20 = arith.constant 0 : index
    %c0_21 = arith.constant 0 : index
    %20 = vector.load %arg0[%c1, %c0_20, %c0_21] : memref<8x2x32xf32, #tpu.memory_space<vmem>>, vector<1x2x32xf32>
    %21 = vector.shape_cast %20 : vector<1x2x32xf32> to vector<2x32xf32>
    %cst_22 = arith.constant dense<0.000000e+00> : vector<2x128xf32>
    %22 = tpu.matmul %21, %13, %cst_22 {dimension_numbers = #tpu.dot_dimension_numbers<[1], [0], [0], [1], [0, 0, 1, 1], [], []>} : vector<2x32xf32>, vector<32x128xf32>, vector<2x128xf32> -> vector<2x128xf32>
    %c1_23 = arith.constant 1 : index
    %c0_24 = arith.constant 0 : index
    %c0_25 = arith.constant 0 : index
    %23 = vector.load %arg10[%c1_23, %c0_24, %c0_25] : memref<8x2x128xf32, #tpu.memory_space<vmem>>, vector<1x2x128xf32>
    %24 = vector.shape_cast %23 : vector<1x2x128xf32> to vector<2x128xf32>
    %25 = vector.shape_cast %22 : vector<2x128xf32> to vector<1x2x128xf32>
    tpu.vector_store %arg10[%c1_23, %c0_24, %c0_25], %25 {strides = array<i32>} : memref<8x2x128xf32, #tpu.memory_space<vmem>>, vector<1x2x128xf32>,
    %c2 = arith.constant 2 : index
    %c0_26 = arith.constant 0 : index
    %c0_27 = arith.constant 0 : index
    %26 = vector.load %arg0[%c2, %c0_26, %c0_27] : memref<8x2x32xf32, #tpu.memory_space<vmem>>, vector<1x2x32xf32>
    %27 = vector.shape_cast %26 : vector<1x2x32xf32> to vector<2x32xf32>
    %cst_28 = arith.constant dense<0.000000e+00> : vector<2x128xf32>
    %28 = tpu.matmul %27, %13, %cst_28 {dimension_numbers = #tpu.dot_dimension_numbers<[1], [0], [0], [1], [0, 0, 1, 1], [], []>} : vector<2x32xf32>, vector<32x128xf32>, vector<2x128xf32> -> vector<2x128xf32>
    %c2_29 = arith.constant 2 : index
    %c0_30 = arith.constant 0 : index
    %c0_31 = arith.constant 0 : index
    %29 = vector.load %arg10[%c2_29, %c0_30, %c0_31] : memref<8x2x128xf32, #tpu.memory_space<vmem>>, vector<1x2x128xf32>
    %30 = vector.shape_cast %29 : vector<1x2x128xf32> to vector<2x128xf32>
    %31 = vector.shape_cast %28 : vector<2x128xf32> to vector<1x2x128xf32>
    tpu.vector_store %arg10[%c2_29, %c0_30, %c0_31], %31 {strides = array<i32>} : memref<8x2x128xf32, #tpu.memory_space<vmem>>, vector<1x2x128xf32>,
    %c3 = arith.constant 3 : index
    %c0_32 = arith.constant 0 : index
    %c0_33 = arith.constant 0 : index
    %32 = vector.load %arg0[%c3, %c0_32, %c0_33] : memref<8x2x32xf32, #tpu.memory_space<vmem>>, vector<1x2x32xf32>
    %33 = vector.shape_cast %32 : vector<1x2x32xf32> to vector<2x32xf32>
    %cst_34 = arith.constant dense<0.000000e+00> : vector<2x128xf32>
    %34 = tpu.matmul %33, %13, %cst_34 {dimension_numbers = #tpu.dot_dimension_numbers<[1], [0], [0], [1], [0, 0, 1, 1], [], []>} : vector<2x32xf32>, vector<32x128xf32>, vector<2x128xf32> -> vector<2x128xf32>
    %c3_35 = arith.constant 3 : index
    %c0_36 = arith.constant 0 : index
    %c0_37 = arith.constant 0 : index
    %35 = vector.load %arg10[%c3_35, %c0_36, %c0_37] : memref<8x2x128xf32, #tpu.memory_space<vmem>>, vector<1x2x128xf32>
    %36 = vector.shape_cast %35 : vector<1x2x128xf32> to vector<2x128xf32>
    %37 = vector.shape_cast %34 : vector<2x128xf32> to vector<1x2x128xf32>
    tpu.vector_store %arg10[%c3_35, %c0_36, %c0_37], %37 {strides = array<i32>} : memref<8x2x128xf32, #tpu.memory_space<vmem>>, vector<1x2x128xf32>,
    %c4 = arith.constant 4 : index
    %c0_38 = arith.constant 0 : index
    %c0_39 = arith.constant 0 : index
    %38 = vector.load %arg0[%c4, %c0_38, %c0_39] : memref<8x2x32xf32, #tpu.memory_space<vmem>>, vector<1x2x32xf32>
    %39 = vector.shape_cast %38 : vector<1x2x32xf32> to vector<2x32xf32>
    %cst_40 = arith.constant dense<0.000000e+00> : vector<2x128xf32>
    %40 = tpu.matmul %39, %13, %cst_40 {dimension_numbers = #tpu.dot_dimension_numbers<[1], [0], [0], [1], [0, 0, 1, 1], [], []>} : vector<2x32xf32>, vector<32x128xf32>, vector<2x128xf32> -> vector<2x128xf32>
    %c4_41 = arith.constant 4 : index
    %c0_42 = arith.constant 0 : index
    %c0_43 = arith.constant 0 : index
    %41 = vector.load %arg10[%c4_41, %c0_42, %c0_43] : memref<8x2x128xf32, #tpu.memory_space<vmem>>, vector<1x2x128xf32>
    %42 = vector.shape_cast %41 : vector<1x2x128xf32> to vector<2x128xf32>
    %43 = vector.shape_cast %40 : vector<2x128xf32> to vector<1x2x128xf32>
    tpu.vector_store %arg10[%c4_41, %c0_42, %c0_43], %43 {strides = array<i32>} : memref<8x2x128xf32, #tpu.memory_space<vmem>>, vector<1x2x128xf32>,
    %c5 = arith.constant 5 : index
    %c0_44 = arith.constant 0 : index
    %c0_45 = arith.constant 0 : index
    %44 = vector.load %arg0[%c5, %c0_44, %c0_45] : memref<8x2x32xf32, #tpu.memory_space<vmem>>, vector<1x2x32xf32>
    %45 = vector.shape_cast %44 : vector<1x2x32xf32> to vector<2x32xf32>
    %cst_46 = arith.constant dense<0.000000e+00> : vector<2x128xf32>
    %46 = tpu.matmul %45, %13, %cst_46 {dimension_numbers = #tpu.dot_dimension_numbers<[1], [0], [0], [1], [0, 0, 1, 1], [], []>} : vector<2x32xf32>, vector<32x128xf32>, vector<2x128xf32> -> vector<2x128xf32>
    %c5_47 = arith.constant 5 : index
    %c0_48 = arith.constant 0 : index
    %c0_49 = arith.constant 0 : index
    %47 = vector.load %arg10[%c5_47, %c0_48, %c0_49] : memref<8x2x128xf32, #tpu.memory_space<vmem>>, vector<1x2x128xf32>
    %48 = vector.shape_cast %47 : vector<1x2x128xf32> to vector<2x128xf32>
    %49 = vector.shape_cast %46 : vector<2x128xf32> to vector<1x2x128xf32>
    tpu.vector_store %arg10[%c5_47, %c0_48, %c0_49], %49 {strides = array<i32>} : memref<8x2x128xf32, #tpu.memory_space<vmem>>, vector<1x2x128xf32>,
    %c6 = arith.constant 6 : index
    %c0_50 = arith.constant 0 : index
    %c0_51 = arith.constant 0 : index
    %50 = vector.load %arg0[%c6, %c0_50, %c0_51] : memref<8x2x32xf32, #tpu.memory_space<vmem>>, vector<1x2x32xf32>
    %51 = vector.shape_cast %50 : vector<1x2x32xf32> to vector<2x32xf32>
    %cst_52 = arith.constant dense<0.000000e+00> : vector<2x128xf32>
    %52 = tpu.matmul %51, %13, %cst_52 {dimension_numbers = #tpu.dot_dimension_numbers<[1], [0], [0], [1], [0, 0, 1, 1], [], []>} : vector<2x32xf32>, vector<32x128xf32>, vector<2x128xf32> -> vector<2x128xf32>
    %c6_53 = arith.constant 6 : index
    %c0_54 = arith.constant 0 : index
    %c0_55 = arith.constant 0 : index
    %53 = vector.load %arg10[%c6_53, %c0_54, %c0_55] : memref<8x2x128xf32, #tpu.memory_space<vmem>>, vector<1x2x128xf32>
    %54 = vector.shape_cast %53 : vector<1x2x128xf32> to vector<2x128xf32>
    %55 = vector.shape_cast %52 : vector<2x128xf32> to vector<1x2x128xf32>
    tpu.vector_store %arg10[%c6_53, %c0_54, %c0_55], %55 {strides = array<i32>} : memref<8x2x128xf32, #tpu.memory_space<vmem>>, vector<1x2x128xf32>,
    %c7 = arith.constant 7 : index
    %c0_56 = arith.constant 0 : index
    %c0_57 = arith.constant 0 : index
    %56 = vector.load %arg0[%c7, %c0_56, %c0_57] : memref<8x2x32xf32, #tpu.memory_space<vmem>>, vector<1x2x32xf32>
    %57 = vector.shape_cast %56 : vector<1x2x32xf32> to vector<2x32xf32>
    %cst_58 = arith.constant dense<0.000000e+00> : vector<2x128xf32>
    %58 = tpu.matmul %57, %13, %cst_58 {dimension_numbers = #tpu.dot_dimension_numbers<[1], [0], [0], [1], [0, 0, 1, 1], [], []>} : vector<2x32xf32>, vector<32x128xf32>, vector<2x128xf32> -> vector<2x128xf32>
    %c7_59 = arith.constant 7 : index
    %c0_60 = arith.constant 0 : index
    %c0_61 = arith.constant 0 : index
    %59 = vector.load %arg10[%c7_59, %c0_60, %c0_61] : memref<8x2x128xf32, #tpu.memory_space<vmem>>, vector<1x2x128xf32>
    %60 = vector.shape_cast %59 : vector<1x2x128xf32> to vector<2x128xf32>
    %61 = vector.shape_cast %58 : vector<2x128xf32> to vector<1x2x128xf32>
    tpu.vector_store %arg10[%c7_59, %c0_60, %c0_61], %61 {strides = array<i32>} : memref<8x2x128xf32, #tpu.memory_space<vmem>>, vector<1x2x128xf32>,
    %c0_62 = arith.constant 0 : index
    %c0_63 = arith.constant 0 : index
    %62 = vector.load %arg8[%c0_62, %c0_63] : memref<32x128xf32, #tpu.memory_space<vmem>>, vector<32x128xf32>
    %c0_64 = arith.constant 0 : index
    %c0_65 = arith.constant 0 : index
    %63 = vector.load %arg7[%c0_64, %c0_65] : memref<2x32xf32, #tpu.memory_space<vmem>>, vector<2x32xf32>
    %cst_66 = arith.constant 0.000000e+00 : f32
    %64 = vector.broadcast %cst_66 : f32 to vector<2x32xf32>
    %c0_67 = arith.constant 0 : index
    %c0_68 = arith.constant 0 : index
    %c0_69 = arith.constant 0 : index
    %65 = vector.load %arg10[%c0_67, %c0_68, %c0_69] : memref<8x2x128xf32, #tpu.memory_space<vmem>>, vector<1x2x128xf32>
    %66 = vector.shape_cast %65 : vector<1x2x128xf32> to vector<2x128xf32>
    %67 = arith.addf %66, %12 : vector<2x128xf32>
    %cst_70 = arith.constant dense<0.000000e+00> : vector<2x128xf32>
    %68 = tpu.matmul %63, %62, %cst_70 {dimension_numbers = #tpu.dot_dimension_numbers<[1], [0], [0], [1], [0, 0, 1, 1], [], []>} : vector<2x32xf32>, vector<32x128xf32>, vector<2x128xf32> -> vector<2x128xf32>
    %69 = arith.addf %67, %68 : vector<2x128xf32>
    %70 = vector.extract_strided_slice %69 {offsets = [0, 0], sizes = [2, 32], strides = [1, 1]} : vector<2x128xf32> to vector<2x32xf32>
    %cst_71 = arith.constant 0.000000e+00 : f32
    %71 = vector.broadcast %cst_71 : f32 to vector<2x32xf32>
    %72 = arith.subf %71, %70 : vector<2x32xf32>
    %73 = math.exp %72 : vector<2x32xf32>
    %cst_72 = arith.constant 1.000000e+00 : f32
    %74 = vector.broadcast %cst_72 : f32 to vector<2x32xf32>
    %75 = arith.addf %74, %73 : vector<2x32xf32>
    %cst_73 = arith.constant 1.000000e+00 : f32
    %76 = vector.broadcast %cst_73 : f32 to vector<2x32xf32>
    %77 = arith.divf %76, %75 : vector<2x32xf32>
    %78 = vector.extract_strided_slice %69 {offsets = [0, 32], sizes = [2, 32], strides = [1, 1]} : vector<2x128xf32> to vector<2x32xf32>
    %cst_74 = arith.constant 0.000000e+00 : f32
    %79 = vector.broadcast %cst_74 : f32 to vector<2x32xf32>
    %80 = arith.subf %79, %78 : vector<2x32xf32>
    %81 = math.exp %80 : vector<2x32xf32>
    %cst_75 = arith.constant 1.000000e+00 : f32
    %82 = vector.broadcast %cst_75 : f32 to vector<2x32xf32>
    %83 = arith.addf %82, %81 : vector<2x32xf32>
    %cst_76 = arith.constant 1.000000e+00 : f32
    %84 = vector.broadcast %cst_76 : f32 to vector<2x32xf32>
    %85 = arith.divf %84, %83 : vector<2x32xf32>
    %86 = vector.extract_strided_slice %69 {offsets = [0, 64], sizes = [2, 32], strides = [1, 1]} : vector<2x128xf32> to vector<2x32xf32>
    %87 = math.tanh %86 : vector<2x32xf32>
    %88 = vector.extract_strided_slice %69 {offsets = [0, 96], sizes = [2, 32], strides = [1, 1]} : vector<2x128xf32> to vector<2x32xf32>
    %cst_77 = arith.constant 0.000000e+00 : f32
    %89 = vector.broadcast %cst_77 : f32 to vector<2x32xf32>
    %90 = arith.subf %89, %88 : vector<2x32xf32>
    %91 = math.exp %90 : vector<2x32xf32>
    %cst_78 = arith.constant 1.000000e+00 : f32
    %92 = vector.broadcast %cst_78 : f32 to vector<2x32xf32>
    %93 = arith.addf %92, %91 : vector<2x32xf32>
    %cst_79 = arith.constant 1.000000e+00 : f32
    %94 = vector.broadcast %cst_79 : f32 to vector<2x32xf32>
    %95 = arith.divf %94, %93 : vector<2x32xf32>
    %96 = arith.mulf %85, %64 : vector<2x32xf32>
    %97 = arith.mulf %77, %87 : vector<2x32xf32>
    %98 = arith.addf %96, %97 : vector<2x32xf32>
    %99 = math.tanh %98 : vector<2x32xf32>
    %100 = arith.mulf %95, %99 : vector<2x32xf32>
    %c0_80 = arith.constant 0 : index
    %c0_81 = arith.constant 0 : index
    %c0_82 = arith.constant 0 : index
    %101 = vector.load %arg9[%c0_80, %c0_81, %c0_82] : memref<8x2x32xf32, #tpu.memory_space<vmem>>, vector<1x2x32xf32>
    %102 = vector.shape_cast %101 : vector<1x2x32xf32> to vector<2x32xf32>
    %103 = vector.shape_cast %100 : vector<2x32xf32> to vector<1x2x32xf32>
    tpu.vector_store %arg9[%c0_80, %c0_81, %c0_82], %103 {strides = array<i32>} : memref<8x2x32xf32, #tpu.memory_space<vmem>>, vector<1x2x32xf32>,
    %c1_83 = arith.constant 1 : index
    %c0_84 = arith.constant 0 : index
    %c0_85 = arith.constant 0 : index
    %104 = vector.load %arg10[%c1_83, %c0_84, %c0_85] : memref<8x2x128xf32, #tpu.memory_space<vmem>>, vector<1x2x128xf32>
    %105 = vector.shape_cast %104 : vector<1x2x128xf32> to vector<2x128xf32>
    %106 = arith.addf %105, %12 : vector<2x128xf32>
    %cst_86 = arith.constant dense<0.000000e+00> : vector<2x128xf32>
    %107 = tpu.matmul %100, %62, %cst_86 {dimension_numbers = #tpu.dot_dimension_numbers<[1], [0], [0], [1], [0, 0, 1, 1], [], []>} : vector<2x32xf32>, vector<32x128xf32>, vector<2x128xf32> -> vector<2x128xf32>
    %108 = arith.addf %106, %107 : vector<2x128xf32>
    %109 = vector.extract_strided_slice %108 {offsets = [0, 0], sizes = [2, 32], strides = [1, 1]} : vector<2x128xf32> to vector<2x32xf32>
    %cst_87 = arith.constant 0.000000e+00 : f32
    %110 = vector.broadcast %cst_87 : f32 to vector<2x32xf32>
    %111 = arith.subf %110, %109 : vector<2x32xf32>
    %112 = math.exp %111 : vector<2x32xf32>
    %cst_88 = arith.constant 1.000000e+00 : f32
    %113 = vector.broadcast %cst_88 : f32 to vector<2x32xf32>
    %114 = arith.addf %113, %112 : vector<2x32xf32>
    %cst_89 = arith.constant 1.000000e+00 : f32
    %115 = vector.broadcast %cst_89 : f32 to vector<2x32xf32>
    %116 = arith.divf %115, %114 : vector<2x32xf32>
    %117 = vector.extract_strided_slice %108 {offsets = [0, 32], sizes = [2, 32], strides = [1, 1]} : vector<2x128xf32> to vector<2x32xf32>
    %cst_90 = arith.constant 0.000000e+00 : f32
    %118 = vector.broadcast %cst_90 : f32 to vector<2x32xf32>
    %119 = arith.subf %118, %117 : vector<2x32xf32>
    %120 = math.exp %119 : vector<2x32xf32>
    %cst_91 = arith.constant 1.000000e+00 : f32
    %121 = vector.broadcast %cst_91 : f32 to vector<2x32xf32>
    %122 = arith.addf %121, %120 : vector<2x32xf32>
    %cst_92 = arith.constant 1.000000e+00 : f32
    %123 = vector.broadcast %cst_92 : f32 to vector<2x32xf32>
    %124 = arith.divf %123, %122 : vector<2x32xf32>
    %125 = vector.extract_strided_slice %108 {offsets = [0, 64], sizes = [2, 32], strides = [1, 1]} : vector<2x128xf32> to vector<2x32xf32>
    %126 = math.tanh %125 : vector<2x32xf32>
    %127 = vector.extract_strided_slice %108 {offsets = [0, 96], sizes = [2, 32], strides = [1, 1]} : vector<2x128xf32> to vector<2x32xf32>
    %cst_93 = arith.constant 0.000000e+00 : f32
    %128 = vector.broadcast %cst_93 : f32 to vector<2x32xf32>
    %129 = arith.subf %128, %127 : vector<2x32xf32>
    %130 = math.exp %129 : vector<2x32xf32>
    %cst_94 = arith.constant 1.000000e+00 : f32
    %131 = vector.broadcast %cst_94 : f32 to vector<2x32xf32>
    %132 = arith.addf %131, %130 : vector<2x32xf32>
    %cst_95 = arith.constant 1.000000e+00 : f32
    %133 = vector.broadcast %cst_95 : f32 to vector<2x32xf32>
    %134 = arith.divf %133, %132 : vector<2x32xf32>
    %135 = arith.mulf %124, %98 : vector<2x32xf32>
    %136 = arith.mulf %116, %126 : vector<2x32xf32>
    %137 = arith.addf %135, %136 : vector<2x32xf32>
    %138 = math.tanh %137 : vector<2x32xf32>
    %139 = arith.mulf %134, %138 : vector<2x32xf32>
    %c1_96 = arith.constant 1 : index
    %c0_97 = arith.constant 0 : index
    %c0_98 = arith.constant 0 : index
    %140 = vector.load %arg9[%c1_96, %c0_97, %c0_98] : memref<8x2x32xf32, #tpu.memory_space<vmem>>, vector<1x2x32xf32>
    %141 = vector.shape_cast %140 : vector<1x2x32xf32> to vector<2x32xf32>
    %142 = vector.shape_cast %139 : vector<2x32xf32> to vector<1x2x32xf32>
    tpu.vector_store %arg9[%c1_96, %c0_97, %c0_98], %142 {strides = array<i32>} : memref<8x2x32xf32, #tpu.memory_space<vmem>>, vector<1x2x32xf32>,
    %c2_99 = arith.constant 2 : index
    %c0_100 = arith.constant 0 : index
    %c0_101 = arith.constant 0 : index
    %143 = vector.load %arg10[%c2_99, %c0_100, %c0_101] : memref<8x2x128xf32, #tpu.memory_space<vmem>>, vector<1x2x128xf32>
    %144 = vector.shape_cast %143 : vector<1x2x128xf32> to vector<2x128xf32>
    %145 = arith.addf %144, %12 : vector<2x128xf32>
    %cst_102 = arith.constant dense<0.000000e+00> : vector<2x128xf32>
    %146 = tpu.matmul %139, %62, %cst_102 {dimension_numbers = #tpu.dot_dimension_numbers<[1], [0], [0], [1], [0, 0, 1, 1], [], []>} : vector<2x32xf32>, vector<32x128xf32>, vector<2x128xf32> -> vector<2x128xf32>
    %147 = arith.addf %145, %146 : vector<2x128xf32>
    %148 = vector.extract_strided_slice %147 {offsets = [0, 0], sizes = [2, 32], strides = [1, 1]} : vector<2x128xf32> to vector<2x32xf32>
    %cst_103 = arith.constant 0.000000e+00 : f32
    %149 = vector.broadcast %cst_103 : f32 to vector<2x32xf32>
    %150 = arith.subf %149, %148 : vector<2x32xf32>
    %151 = math.exp %150 : vector<2x32xf32>
    %cst_104 = arith.constant 1.000000e+00 : f32
    %152 = vector.broadcast %cst_104 : f32 to vector<2x32xf32>
    %153 = arith.addf %152, %151 : vector<2x32xf32>
    %cst_105 = arith.constant 1.000000e+00 : f32
    %154 = vector.broadcast %cst_105 : f32 to vector<2x32xf32>
    %155 = arith.divf %154, %153 : vector<2x32xf32>
    %156 = vector.extract_strided_slice %147 {offsets = [0, 32], sizes = [2, 32], strides = [1, 1]} : vector<2x128xf32> to vector<2x32xf32>
    %cst_106 = arith.constant 0.000000e+00 : f32
    %157 = vector.broadcast %cst_106 : f32 to vector<2x32xf32>
    %158 = arith.subf %157, %156 : vector<2x32xf32>
    %159 = math.exp %158 : vector<2x32xf32>
    %cst_107 = arith.constant 1.000000e+00 : f32
    %160 = vector.broadcast %cst_107 : f32 to vector<2x32xf32>
    %161 = arith.addf %160, %159 : vector<2x32xf32>
    %cst_108 = arith.constant 1.000000e+00 : f32
    %162 = vector.broadcast %cst_108 : f32 to vector<2x32xf32>
    %163 = arith.divf %162, %161 : vector<2x32xf32>
    %164 = vector.extract_strided_slice %147 {offsets = [0, 64], sizes = [2, 32], strides = [1, 1]} : vector<2x128xf32> to vector<2x32xf32>
    %165 = math.tanh %164 : vector<2x32xf32>
    %166 = vector.extract_strided_slice %147 {offsets = [0, 96], sizes = [2, 32], strides = [1, 1]} : vector<2x128xf32> to vector<2x32xf32>
    %cst_109 = arith.constant 0.000000e+00 : f32
    %167 = vector.broadcast %cst_109 : f32 to vector<2x32xf32>
    %168 = arith.subf %167, %166 : vector<2x32xf32>
    %169 = math.exp %168 : vector<2x32xf32>
    %cst_110 = arith.constant 1.000000e+00 : f32
    %170 = vector.broadcast %cst_110 : f32 to vector<2x32xf32>
    %171 = arith.addf %170, %169 : vector<2x32xf32>
    %cst_111 = arith.constant 1.000000e+00 : f32
    %172 = vector.broadcast %cst_111 : f32 to vector<2x32xf32>
    %173 = arith.divf %172, %171 : vector<2x32xf32>
    %174 = arith.mulf %163, %137 : vector<2x32xf32>
    %175 = arith.mulf %155, %165 : vector<2x32xf32>
    %176 = arith.addf %174, %175 : vector<2x32xf32>
    %177 = math.tanh %176 : vector<2x32xf32>
    %178 = arith.mulf %173, %177 : vector<2x32xf32>
    %c2_112 = arith.constant 2 : index
    %c0_113 = arith.constant 0 : index
    %c0_114 = arith.constant 0 : index
    %179 = vector.load %arg9[%c2_112, %c0_113, %c0_114] : memref<8x2x32xf32, #tpu.memory_space<vmem>>, vector<1x2x32xf32>
    %180 = vector.shape_cast %179 : vector<1x2x32xf32> to vector<2x32xf32>
    %181 = vector.shape_cast %178 : vector<2x32xf32> to vector<1x2x32xf32>
    tpu.vector_store %arg9[%c2_112, %c0_113, %c0_114], %181 {strides = array<i32>} : memref<8x2x32xf32, #tpu.memory_space<vmem>>, vector<1x2x32xf32>,
    %c3_115 = arith.constant 3 : index
    %c0_116 = arith.constant 0 : index
    %c0_117 = arith.constant 0 : index
    %182 = vector.load %arg10[%c3_115, %c0_116, %c0_117] : memref<8x2x128xf32, #tpu.memory_space<vmem>>, vector<1x2x128xf32>
    %183 = vector.shape_cast %182 : vector<1x2x128xf32> to vector<2x128xf32>
    %184 = arith.addf %183, %12 : vector<2x128xf32>
    %cst_118 = arith.constant dense<0.000000e+00> : vector<2x128xf32>
    %185 = tpu.matmul %178, %62, %cst_118 {dimension_numbers = #tpu.dot_dimension_numbers<[1], [0], [0], [1], [0, 0, 1, 1], [], []>} : vector<2x32xf32>, vector<32x128xf32>, vector<2x128xf32> -> vector<2x128xf32>
    %186 = arith.addf %184, %185 : vector<2x128xf32>
    %187 = vector.extract_strided_slice %186 {offsets = [0, 0], sizes = [2, 32], strides = [1, 1]} : vector<2x128xf32> to vector<2x32xf32>
    %cst_119 = arith.constant 0.000000e+00 : f32
    %188 = vector.broadcast %cst_119 : f32 to vector<2x32xf32>
    %189 = arith.subf %188, %187 : vector<2x32xf32>
    %190 = math.exp %189 : vector<2x32xf32>
    %cst_120 = arith.constant 1.000000e+00 : f32
    %191 = vector.broadcast %cst_120 : f32 to vector<2x32xf32>
    %192 = arith.addf %191, %190 : vector<2x32xf32>
    %cst_121 = arith.constant 1.000000e+00 : f32
    %193 = vector.broadcast %cst_121 : f32 to vector<2x32xf32>
    %194 = arith.divf %193, %192 : vector<2x32xf32>
    %195 = vector.extract_strided_slice %186 {offsets = [0, 32], sizes = [2, 32], strides = [1, 1]} : vector<2x128xf32> to vector<2x32xf32>
    %cst_122 = arith.constant 0.000000e+00 : f32
    %196 = vector.broadcast %cst_122 : f32 to vector<2x32xf32>
    %197 = arith.subf %196, %195 : vector<2x32xf32>
    %198 = math.exp %197 : vector<2x32xf32>
    %cst_123 = arith.constant 1.000000e+00 : f32
    %199 = vector.broadcast %cst_123 : f32 to vector<2x32xf32>
    %200 = arith.addf %199, %198 : vector<2x32xf32>
    %cst_124 = arith.constant 1.000000e+00 : f32
    %201 = vector.broadcast %cst_124 : f32 to vector<2x32xf32>
    %202 = arith.divf %201, %200 : vector<2x32xf32>
    %203 = vector.extract_strided_slice %186 {offsets = [0, 64], sizes = [2, 32], strides = [1, 1]} : vector<2x128xf32> to vector<2x32xf32>
    %204 = math.tanh %203 : vector<2x32xf32>
    %205 = vector.extract_strided_slice %186 {offsets = [0, 96], sizes = [2, 32], strides = [1, 1]} : vector<2x128xf32> to vector<2x32xf32>
    %cst_125 = arith.constant 0.000000e+00 : f32
    %206 = vector.broadcast %cst_125 : f32 to vector<2x32xf32>
    %207 = arith.subf %206, %205 : vector<2x32xf32>
    %208 = math.exp %207 : vector<2x32xf32>
    %cst_126 = arith.constant 1.000000e+00 : f32
    %209 = vector.broadcast %cst_126 : f32 to vector<2x32xf32>
    %210 = arith.addf %209, %208 : vector<2x32xf32>
    %cst_127 = arith.constant 1.000000e+00 : f32
    %211 = vector.broadcast %cst_127 : f32 to vector<2x32xf32>
    %212 = arith.divf %211, %210 : vector<2x32xf32>
    %213 = arith.mulf %202, %176 : vector<2x32xf32>
    %214 = arith.mulf %194, %204 : vector<2x32xf32>
    %215 = arith.addf %213, %214 : vector<2x32xf32>
    %216 = math.tanh %215 : vector<2x32xf32>
    %217 = arith.mulf %212, %216 : vector<2x32xf32>
    %c3_128 = arith.constant 3 : index
    %c0_129 = arith.constant 0 : index
    %c0_130 = arith.constant 0 : index
    %218 = vector.load %arg9[%c3_128, %c0_129, %c0_130] : memref<8x2x32xf32, #tpu.memory_space<vmem>>, vector<1x2x32xf32>
    %219 = vector.shape_cast %218 : vector<1x2x32xf32> to vector<2x32xf32>
    %220 = vector.shape_cast %217 : vector<2x32xf32> to vector<1x2x32xf32>
    tpu.vector_store %arg9[%c3_128, %c0_129, %c0_130], %220 {strides = array<i32>} : memref<8x2x32xf32, #tpu.memory_space<vmem>>, vector<1x2x32xf32>,
    %c4_131 = arith.constant 4 : index
    %c0_132 = arith.constant 0 : index
    %c0_133 = arith.constant 0 : index
    %221 = vector.load %arg10[%c4_131, %c0_132, %c0_133] : memref<8x2x128xf32, #tpu.memory_space<vmem>>, vector<1x2x128xf32>
    %222 = vector.shape_cast %221 : vector<1x2x128xf32> to vector<2x128xf32>
    %223 = arith.addf %222, %12 : vector<2x128xf32>
    %cst_134 = arith.constant dense<0.000000e+00> : vector<2x128xf32>
    %224 = tpu.matmul %217, %62, %cst_134 {dimension_numbers = #tpu.dot_dimension_numbers<[1], [0], [0], [1], [0, 0, 1, 1], [], []>} : vector<2x32xf32>, vector<32x128xf32>, vector<2x128xf32> -> vector<2x128xf32>
    %225 = arith.addf %223, %224 : vector<2x128xf32>
    %226 = vector.extract_strided_slice %225 {offsets = [0, 0], sizes = [2, 32], strides = [1, 1]} : vector<2x128xf32> to vector<2x32xf32>
    %cst_135 = arith.constant 0.000000e+00 : f32
    %227 = vector.broadcast %cst_135 : f32 to vector<2x32xf32>
    %228 = arith.subf %227, %226 : vector<2x32xf32>
    %229 = math.exp %228 : vector<2x32xf32>
    %cst_136 = arith.constant 1.000000e+00 : f32
    %230 = vector.broadcast %cst_136 : f32 to vector<2x32xf32>
    %231 = arith.addf %230, %229 : vector<2x32xf32>
    %cst_137 = arith.constant 1.000000e+00 : f32
    %232 = vector.broadcast %cst_137 : f32 to vector<2x32xf32>
    %233 = arith.divf %232, %231 : vector<2x32xf32>
    %234 = vector.extract_strided_slice %225 {offsets = [0, 32], sizes = [2, 32], strides = [1, 1]} : vector<2x128xf32> to vector<2x32xf32>
    %cst_138 = arith.constant 0.000000e+00 : f32
    %235 = vector.broadcast %cst_138 : f32 to vector<2x32xf32>
    %236 = arith.subf %235, %234 : vector<2x32xf32>
    %237 = math.exp %236 : vector<2x32xf32>
    %cst_139 = arith.constant 1.000000e+00 : f32
    %238 = vector.broadcast %cst_139 : f32 to vector<2x32xf32>
    %239 = arith.addf %238, %237 : vector<2x32xf32>
    %cst_140 = arith.constant 1.000000e+00 : f32
    %240 = vector.broadcast %cst_140 : f32 to vector<2x32xf32>
    %241 = arith.divf %240, %239 : vector<2x32xf32>
    %242 = vector.extract_strided_slice %225 {offsets = [0, 64], sizes = [2, 32], strides = [1, 1]} : vector<2x128xf32> to vector<2x32xf32>
    %243 = math.tanh %242 : vector<2x32xf32>
    %244 = vector.extract_strided_slice %225 {offsets = [0, 96], sizes = [2, 32], strides = [1, 1]} : vector<2x128xf32> to vector<2x32xf32>
    %cst_141 = arith.constant 0.000000e+00 : f32
    %245 = vector.broadcast %cst_141 : f32 to vector<2x32xf32>
    %246 = arith.subf %245, %244 : vector<2x32xf32>
    %247 = math.exp %246 : vector<2x32xf32>
    %cst_142 = arith.constant 1.000000e+00 : f32
    %248 = vector.broadcast %cst_142 : f32 to vector<2x32xf32>
    %249 = arith.addf %248, %247 : vector<2x32xf32>
    %cst_143 = arith.constant 1.000000e+00 : f32
    %250 = vector.broadcast %cst_143 : f32 to vector<2x32xf32>
    %251 = arith.divf %250, %249 : vector<2x32xf32>
    %252 = arith.mulf %241, %215 : vector<2x32xf32>
    %253 = arith.mulf %233, %243 : vector<2x32xf32>
    %254 = arith.addf %252, %253 : vector<2x32xf32>
    %255 = math.tanh %254 : vector<2x32xf32>
    %256 = arith.mulf %251, %255 : vector<2x32xf32>
    %c4_144 = arith.constant 4 : index
    %c0_145 = arith.constant 0 : index
    %c0_146 = arith.constant 0 : index
    %257 = vector.load %arg9[%c4_144, %c0_145, %c0_146] : memref<8x2x32xf32, #tpu.memory_space<vmem>>, vector<1x2x32xf32>
    %258 = vector.shape_cast %257 : vector<1x2x32xf32> to vector<2x32xf32>
    %259 = vector.shape_cast %256 : vector<2x32xf32> to vector<1x2x32xf32>
    tpu.vector_store %arg9[%c4_144, %c0_145, %c0_146], %259 {strides = array<i32>} : memref<8x2x32xf32, #tpu.memory_space<vmem>>, vector<1x2x32xf32>,
    %c5_147 = arith.constant 5 : index
    %c0_148 = arith.constant 0 : index
    %c0_149 = arith.constant 0 : index
    %260 = vector.load %arg10[%c5_147, %c0_148, %c0_149] : memref<8x2x128xf32, #tpu.memory_space<vmem>>, vector<1x2x128xf32>
    %261 = vector.shape_cast %260 : vector<1x2x128xf32> to vector<2x128xf32>
    %262 = arith.addf %261, %12 : vector<2x128xf32>
    %cst_150 = arith.constant dense<0.000000e+00> : vector<2x128xf32>
    %263 = tpu.matmul %256, %62, %cst_150 {dimension_numbers = #tpu.dot_dimension_numbers<[1], [0], [0], [1], [0, 0, 1, 1], [], []>} : vector<2x32xf32>, vector<32x128xf32>, vector<2x128xf32> -> vector<2x128xf32>
    %264 = arith.addf %262, %263 : vector<2x128xf32>
    %265 = vector.extract_strided_slice %264 {offsets = [0, 0], sizes = [2, 32], strides = [1, 1]} : vector<2x128xf32> to vector<2x32xf32>
    %cst_151 = arith.constant 0.000000e+00 : f32
    %266 = vector.broadcast %cst_151 : f32 to vector<2x32xf32>
    %267 = arith.subf %266, %265 : vector<2x32xf32>
    %268 = math.exp %267 : vector<2x32xf32>
    %cst_152 = arith.constant 1.000000e+00 : f32
    %269 = vector.broadcast %cst_152 : f32 to vector<2x32xf32>
    %270 = arith.addf %269, %268 : vector<2x32xf32>
    %cst_153 = arith.constant 1.000000e+00 : f32
    %271 = vector.broadcast %cst_153 : f32 to vector<2x32xf32>
    %272 = arith.divf %271, %270 : vector<2x32xf32>
    %273 = vector.extract_strided_slice %264 {offsets = [0, 32], sizes = [2, 32], strides = [1, 1]} : vector<2x128xf32> to vector<2x32xf32>
    %cst_154 = arith.constant 0.000000e+00 : f32
    %274 = vector.broadcast %cst_154 : f32 to vector<2x32xf32>
    %275 = arith.subf %274, %273 : vector<2x32xf32>
    %276 = math.exp %275 : vector<2x32xf32>
    %cst_155 = arith.constant 1.000000e+00 : f32
    %277 = vector.broadcast %cst_155 : f32 to vector<2x32xf32>
    %278 = arith.addf %277, %276 : vector<2x32xf32>
    %cst_156 = arith.constant 1.000000e+00 : f32
    %279 = vector.broadcast %cst_156 : f32 to vector<2x32xf32>
    %280 = arith.divf %279, %278 : vector<2x32xf32>
    %281 = vector.extract_strided_slice %264 {offsets = [0, 64], sizes = [2, 32], strides = [1, 1]} : vector<2x128xf32> to vector<2x32xf32>
    %282 = math.tanh %281 : vector<2x32xf32>
    %283 = vector.extract_strided_slice %264 {offsets = [0, 96], sizes = [2, 32], strides = [1, 1]} : vector<2x128xf32> to vector<2x32xf32>
    %cst_157 = arith.constant 0.000000e+00 : f32
    %284 = vector.broadcast %cst_157 : f32 to vector<2x32xf32>
    %285 = arith.subf %284, %283 : vector<2x32xf32>
    %286 = math.exp %285 : vector<2x32xf32>
    %cst_158 = arith.constant 1.000000e+00 : f32
    %287 = vector.broadcast %cst_158 : f32 to vector<2x32xf32>
    %288 = arith.addf %287, %286 : vector<2x32xf32>
    %cst_159 = arith.constant 1.000000e+00 : f32
    %289 = vector.broadcast %cst_159 : f32 to vector<2x32xf32>
    %290 = arith.divf %289, %288 : vector<2x32xf32>
    %291 = arith.mulf %280, %254 : vector<2x32xf32>
    %292 = arith.mulf %272, %282 : vector<2x32xf32>
    %293 = arith.addf %291, %292 : vector<2x32xf32>
    %294 = math.tanh %293 : vector<2x32xf32>
    %295 = arith.mulf %290, %294 : vector<2x32xf32>
    %c5_160 = arith.constant 5 : index
    %c0_161 = arith.constant 0 : index
    %c0_162 = arith.constant 0 : index
    %296 = vector.load %arg9[%c5_160, %c0_161, %c0_162] : memref<8x2x32xf32, #tpu.memory_space<vmem>>, vector<1x2x32xf32>
    %297 = vector.shape_cast %296 : vector<1x2x32xf32> to vector<2x32xf32>
    %298 = vector.shape_cast %295 : vector<2x32xf32> to vector<1x2x32xf32>
    tpu.vector_store %arg9[%c5_160, %c0_161, %c0_162], %298 {strides = array<i32>} : memref<8x2x32xf32, #tpu.memory_space<vmem>>, vector<1x2x32xf32>,
    %c6_163 = arith.constant 6 : index
    %c0_164 = arith.constant 0 : index
    %c0_165 = arith.constant 0 : index
    %299 = vector.load %arg10[%c6_163, %c0_164, %c0_165] : memref<8x2x128xf32, #tpu.memory_space<vmem>>, vector<1x2x128xf32>
    %300 = vector.shape_cast %299 : vector<1x2x128xf32> to vector<2x128xf32>
    %301 = arith.addf %300, %12 : vector<2x128xf32>
    %cst_166 = arith.constant dense<0.000000e+00> : vector<2x128xf32>
    %302 = tpu.matmul %295, %62, %cst_166 {dimension_numbers = #tpu.dot_dimension_numbers<[1], [0], [0], [1], [0, 0, 1, 1], [], []>} : vector<2x32xf32>, vector<32x128xf32>, vector<2x128xf32> -> vector<2x128xf32>
    %303 = arith.addf %301, %302 : vector<2x128xf32>
    %304 = vector.extract_strided_slice %303 {offsets = [0, 0], sizes = [2, 32], strides = [1, 1]} : vector<2x128xf32> to vector<2x32xf32>
    %cst_167 = arith.constant 0.000000e+00 : f32
    %305 = vector.broadcast %cst_167 : f32 to vector<2x32xf32>
    %306 = arith.subf %305, %304 : vector<2x32xf32>
    %307 = math.exp %306 : vector<2x32xf32>
    %cst_168 = arith.constant 1.000000e+00 : f32
    %308 = vector.broadcast %cst_168 : f32 to vector<2x32xf32>
    %309 = arith.addf %308, %307 : vector<2x32xf32>
    %cst_169 = arith.constant 1.000000e+00 : f32
    %310 = vector.broadcast %cst_169 : f32 to vector<2x32xf32>
    %311 = arith.divf %310, %309 : vector<2x32xf32>
    %312 = vector.extract_strided_slice %303 {offsets = [0, 32], sizes = [2, 32], strides = [1, 1]} : vector<2x128xf32> to vector<2x32xf32>
    %cst_170 = arith.constant 0.000000e+00 : f32
    %313 = vector.broadcast %cst_170 : f32 to vector<2x32xf32>
    %314 = arith.subf %313, %312 : vector<2x32xf32>
    %315 = math.exp %314 : vector<2x32xf32>
    %cst_171 = arith.constant 1.000000e+00 : f32
    %316 = vector.broadcast %cst_171 : f32 to vector<2x32xf32>
    %317 = arith.addf %316, %315 : vector<2x32xf32>
    %cst_172 = arith.constant 1.000000e+00 : f32
    %318 = vector.broadcast %cst_172 : f32 to vector<2x32xf32>
    %319 = arith.divf %318, %317 : vector<2x32xf32>
    %320 = vector.extract_strided_slice %303 {offsets = [0, 64], sizes = [2, 32], strides = [1, 1]} : vector<2x128xf32> to vector<2x32xf32>
    %321 = math.tanh %320 : vector<2x32xf32>
    %322 = vector.extract_strided_slice %303 {offsets = [0, 96], sizes = [2, 32], strides = [1, 1]} : vector<2x128xf32> to vector<2x32xf32>
    %cst_173 = arith.constant 0.000000e+00 : f32
    %323 = vector.broadcast %cst_173 : f32 to vector<2x32xf32>
    %324 = arith.subf %323, %322 : vector<2x32xf32>
    %325 = math.exp %324 : vector<2x32xf32>
    %cst_174 = arith.constant 1.000000e+00 : f32
    %326 = vector.broadcast %cst_174 : f32 to vector<2x32xf32>
    %327 = arith.addf %326, %325 : vector<2x32xf32>
    %cst_175 = arith.constant 1.000000e+00 : f32
    %328 = vector.broadcast %cst_175 : f32 to vector<2x32xf32>
    %329 = arith.divf %328, %327 : vector<2x32xf32>
    %330 = arith.mulf %319, %293 : vector<2x32xf32>
    %331 = arith.mulf %311, %321 : vector<2x32xf32>
    %332 = arith.addf %330, %331 : vector<2x32xf32>
    %333 = math.tanh %332 : vector<2x32xf32>
    %334 = arith.mulf %329, %333 : vector<2x32xf32>
    %c6_176 = arith.constant 6 : index
    %c0_177 = arith.constant 0 : index
    %c0_178 = arith.constant 0 : index
    %335 = vector.load %arg9[%c6_176, %c0_177, %c0_178] : memref<8x2x32xf32, #tpu.memory_space<vmem>>, vector<1x2x32xf32>
    %336 = vector.shape_cast %335 : vector<1x2x32xf32> to vector<2x32xf32>
    %337 = vector.shape_cast %334 : vector<2x32xf32> to vector<1x2x32xf32>
    tpu.vector_store %arg9[%c6_176, %c0_177, %c0_178], %337 {strides = array<i32>} : memref<8x2x32xf32, #tpu.memory_space<vmem>>, vector<1x2x32xf32>,
    %c7_179 = arith.constant 7 : index
    %c0_180 = arith.constant 0 : index
    %c0_181 = arith.constant 0 : index
    %338 = vector.load %arg10[%c7_179, %c0_180, %c0_181] : memref<8x2x128xf32, #tpu.memory_space<vmem>>, vector<1x2x128xf32>
    %339 = vector.shape_cast %338 : vector<1x2x128xf32> to vector<2x128xf32>
    %340 = arith.addf %339, %12 : vector<2x128xf32>
    %cst_182 = arith.constant dense<0.000000e+00> : vector<2x128xf32>
    %341 = tpu.matmul %334, %62, %cst_182 {dimension_numbers = #tpu.dot_dimension_numbers<[1], [0], [0], [1], [0, 0, 1, 1], [], []>} : vector<2x32xf32>, vector<32x128xf32>, vector<2x128xf32> -> vector<2x128xf32>
    %342 = arith.addf %340, %341 : vector<2x128xf32>
    %343 = vector.extract_strided_slice %342 {offsets = [0, 0], sizes = [2, 32], strides = [1, 1]} : vector<2x128xf32> to vector<2x32xf32>
    %cst_183 = arith.constant 0.000000e+00 : f32
    %344 = vector.broadcast %cst_183 : f32 to vector<2x32xf32>
    %345 = arith.subf %344, %343 : vector<2x32xf32>
    %346 = math.exp %345 : vector<2x32xf32>
    %cst_184 = arith.constant 1.000000e+00 : f32
    %347 = vector.broadcast %cst_184 : f32 to vector<2x32xf32>
    %348 = arith.addf %347, %346 : vector<2x32xf32>
    %cst_185 = arith.constant 1.000000e+00 : f32
    %349 = vector.broadcast %cst_185 : f32 to vector<2x32xf32>
    %350 = arith.divf %349, %348 : vector<2x32xf32>
    %351 = vector.extract_strided_slice %342 {offsets = [0, 32], sizes = [2, 32], strides = [1, 1]} : vector<2x128xf32> to vector<2x32xf32>
    %cst_186 = arith.constant 0.000000e+00 : f32
    %352 = vector.broadcast %cst_186 : f32 to vector<2x32xf32>
    %353 = arith.subf %352, %351 : vector<2x32xf32>
    %354 = math.exp %353 : vector<2x32xf32>
    %cst_187 = arith.constant 1.000000e+00 : f32
    %355 = vector.broadcast %cst_187 : f32 to vector<2x32xf32>
    %356 = arith.addf %355, %354 : vector<2x32xf32>
    %cst_188 = arith.constant 1.000000e+00 : f32
    %357 = vector.broadcast %cst_188 : f32 to vector<2x32xf32>
    %358 = arith.divf %357, %356 : vector<2x32xf32>
    %359 = vector.extract_strided_slice %342 {offsets = [0, 64], sizes = [2, 32], strides = [1, 1]} : vector<2x128xf32> to vector<2x32xf32>
    %360 = math.tanh %359 : vector<2x32xf32>
    %361 = vector.extract_strided_slice %342 {offsets = [0, 96], sizes = [2, 32], strides = [1, 1]} : vector<2x128xf32> to vector<2x32xf32>
    %cst_189 = arith.constant 0.000000e+00 : f32
    %362 = vector.broadcast %cst_189 : f32 to vector<2x32xf32>
    %363 = arith.subf %362, %361 : vector<2x32xf32>
    %364 = math.exp %363 : vector<2x32xf32>
    %cst_190 = arith.constant 1.000000e+00 : f32
    %365 = vector.broadcast %cst_190 : f32 to vector<2x32xf32>
    %366 = arith.addf %365, %364 : vector<2x32xf32>
    %cst_191 = arith.constant 1.000000e+00 : f32
    %367 = vector.broadcast %cst_191 : f32 to vector<2x32xf32>
    %368 = arith.divf %367, %366 : vector<2x32xf32>
    %369 = arith.mulf %358, %332 : vector<2x32xf32>
    %370 = arith.mulf %350, %360 : vector<2x32xf32>
    %371 = arith.addf %369, %370 : vector<2x32xf32>
    %372 = math.tanh %371 : vector<2x32xf32>
    %373 = arith.mulf %368, %372 : vector<2x32xf32>
    %c7_192 = arith.constant 7 : index
    %c0_193 = arith.constant 0 : index
    %c0_194 = arith.constant 0 : index
    %374 = vector.load %arg9[%c7_192, %c0_193, %c0_194] : memref<8x2x32xf32, #tpu.memory_space<vmem>>, vector<1x2x32xf32>
    %375 = vector.shape_cast %374 : vector<1x2x32xf32> to vector<2x32xf32>
    %376 = vector.shape_cast %373 : vector<2x32xf32> to vector<1x2x32xf32>
    tpu.vector_store %arg9[%c7_192, %c0_193, %c0_194], %376 {strides = array<i32>} : memref<8x2x32xf32, #tpu.memory_space<vmem>>, vector<1x2x32xf32>,
    return
  }
}

</mosaic_0001>

<bundles_post_ra>
// kernel: qgen_forward.3
= control target key start
LH: loop header
LB: loop body
LE: loop exit
PB: predicated region body
PF: predicated region fallthrough
CT: control target
= control target key end

     0   :  { %8 = vsyncpa [#allocation4], 0  ;;  %s843_s0 = inlined_call_operand.vmem [shape: f32[16,32], index: 0, kind: input, shape index: {}]   ;;  %s844_s1 = inlined_call_operand.vmem [shape: f32[32,5120], index: 1, kind: input, shape index: {}]   ;;  %s845_s2 = inlined_call_operand.vmem [shape: f32[1,5120], index: 2, kind: input, shape index: {}]   ;;  %s846_s3 = inlined_call_operand.hbm [shape: f32[16,4901], index: 3, kind: output, shape index: {}]  }
   0x1   :  { %10 = vsyncpa [#allocation4 + $0x1], 0  ;;  %s650_s12 = smov 0   ;;  %s652_s13 = smov 0  }
   0x2   :  { %s654_s14 = smov 0   ;;  %s656_s15 = smov 0  }
   0x3 LB: > { %s671_s16 = sadd.s32 4294967295, %s625_s15   ;;  %s480_s17 = sadd.s32 4294967294, %s625_s15   ;;  %s625_s15 = sphi %s656_s15, %s853_s15   ;;  %s621_s14 = sphi %s654_s14, %s852_s14   ;;  %s617_s13 = sphi %s652_s13, %s851_s13   ;;  %s613_s12 = sphi %s650_s12, %s850_s12  }
   0x4   : > { %s675_s18 = sadd.s32 1, %s625_s15   ;;  %s44_s19 = sadd.s32 1, %s621_s14 }
   0x5   : > { %s41_s20 = ssub.s32 %s625_s15, %s675_s18  ;;  %p51_p0 = scmp.ne.s32.totalorder %s621_s14, %s617_s13 }
   0x6   : > { %p42_p1 = scmp.eq.s32.totalorder %s41_s20, 0  ;;  %p52_p2 = scmp.eq.s32.totalorder %s625_s15, 0 }
   0x7   : > { %p107_p3 = scmp.eq.s32.totalorder %s671_s16, 9  ;;  %p112_p4 = scmp.ne.s32.totalorder %s617_s13, %s613_s12 }
   0x8   : > { %s687_s21 = scalar_select %p42_p1, %s621_s14, %s44_s19  }
   0x9   : > { %p53_p5 = por %p52_p2, %p51_p0  ;;  %p689_p6 = por %p107_p3, %p51_p0 }
   0xa   : > { %p113_p7 = scmp.eq.s32.totalorder %s480_s17, 9  ;;  %p482_p9 = scmp.ge.s32.totalorder %s625_s15, 10 }
   0xc   : > { %p693_p8 = por %p113_p7, %p112_p4  ;;  %132 = sbr.rel (%p482_p9) target bundleno = 37 (0x25), region = 20 }
  0x11   : > { %135 = sbr.rel (!%p53_p5) target bundleno = 37 (0x25), region = 24  ;;  %s137_s24 = sand.u32 (%p53_p5), 1, %s621_s14  }
  0x12   : > { %s508_s25 = sshll.u32 (%p53_p5), %s625_s15, 5  ;;  %s483_s26 = sshll.u32 (%p53_p5), %s137_s24, 7 }
  0x13   : > { %s703_s29 = scalar_lea.vmem (%p53_p5), %s844_s1, %s508_s25  ;;  %s139_s30 = scalar_lea.vmem (%p53_p5), [#allocation2], %s483_s26 }
  0x14   : > { %v155_v0 = vld [vmem:[%s703_s29] sm:$0xff] (%p53_p5)  ;;  %v157_v1 = vld [vmem:[%s703_s29 + $0x8] sm:$0xff] (%p53_p5)  ;;  %v159_v2 = vld [vmem:[%s703_s29 + $0x10] sm:$0xff] (%p53_p5) }
  0x15   : > { %156 = vst [vmem:[%s139_s30] sm:$0xff] (%p53_p5), %v155_v0  ;;  %v161_v3 = vld [vmem:[%s703_s29 + $0x18] sm:$0xff] (%p53_p5)  ;;  %v163_v4 = vld [vmem:[%s703_s29 + $0x140] sm:$0xff] (%p53_p5)  ;;  %v165_v5 = vld [vmem:[%s703_s29 + $0x148] sm:$0xff] (%p53_p5) }
  0x16   : > { %158 = vst [vmem:[%s139_s30 + $0x8] sm:$0xff] %v157_v1  ;;  %v167_v6 = vld [vmem:[%s703_s29 + $0x150] sm:$0xff]  ;;  %v169_v7 = vld [vmem:[%s703_s29 + $0x158] sm:$0xff]  ;;  %v171_v8 = vld [vmem:[%s703_s29 + $0x280] sm:$0xff] }
  0x17   : > { %160 = vst [vmem:[%s139_s30 + $0x10] sm:$0xff] %v159_v2  ;;  %v173_v9 = vld [vmem:[%s703_s29 + $0x288] sm:$0xff]  ;;  %v175_v10 = vld [vmem:[%s703_s29 + $0x290] sm:$0xff]  ;;  %v177_v11 = vld [vmem:[%s703_s29 + $0x298] sm:$0xff] }
  0x18   : > { %162 = vst [vmem:[%s139_s30 + $0x18] sm:$0xff] %v161_v3  ;;  %v179_v12 = vld [vmem:[%s703_s29 + $0x3c0] sm:$0xff]  ;;  %v181_v13 = vld [vmem:[%s703_s29 + $0x3c8] sm:$0xff]  ;;  %v183_v14 = vld [vmem:[%s703_s29 + $0x3d0] sm:$0xff] }
  0x19   : > { %164 = vst [vmem:[%s139_s30 + $0x20] sm:$0xff] %v163_v4  ;;  %v185_v15 = vld [vmem:[%s703_s29 + $0x3d8] sm:$0xff] }
  0x1a   : > { %166 = vst [vmem:[%s139_s30 + $0x28] sm:$0xff] %v165_v5 }
  0x1b   : > { %168 = vst [vmem:[%s139_s30 + $0x30] sm:$0xff] %v167_v6 }
  0x1c   : > { %170 = vst [vmem:[%s139_s30 + $0x38] sm:$0xff] %v169_v7 }
  0x1d   : > { %172 = vst [vmem:[%s139_s30 + $0x40] sm:$0xff] %v171_v8 }
  0x1e   : > { %174 = vst [vmem:[%s139_s30 + $0x48] sm:$0xff] %v173_v9 }
  0x1f   : > { %176 = vst [vmem:[%s139_s30 + $0x50] sm:$0xff] %v175_v10 }
  0x20   : > { %178 = vst [vmem:[%s139_s30 + $0x58] sm:$0xff] %v177_v11 }
  0x21   : > { %180 = vst [vmem:[%s139_s30 + $0x60] sm:$0xff] %v179_v12 }
  0x22   : > { %182 = vst [vmem:[%s139_s30 + $0x68] sm:$0xff] %v181_v13 }
  0x23   : > { %184 = vst [vmem:[%s139_s30 + $0x70] sm:$0xff] %v183_v14 }
  0x24   : > { %186 = vst [vmem:[%s139_s30 + $0x78] sm:$0xff] %v185_v15 }
  0x25 PF: > { %p486_p10 = scmp.ge.s32.totalorder %s625_s15, 1  ;;  %p199_p11 = scmp.lt.s32.totalorder %s625_s15, 11 }
  0x27   : > { %p200_p12 = pnand %p486_p10, %p199_p11 }
  0x28   : > { %s724_s4 = sand.u32 (!%p200_p12), 1, %s617_s13   ;;  %s760_s11 = sshll.u32 (!%p200_p12), %s671_s16, 2 }
  0x29   : > { %203 = sbr.rel (%p200_p12) target bundleno = 230 (0xe6), region = 51  ;;  %s487_s5 = sshll.u32 (!%p200_p12), %s724_s4, 7 }
  0x2a   : > { %s727_s6 = scalar_lea.vmem (!%p200_p12), [#allocation2], %s487_s5  ;;  %p235_p13 = scmp.lt.s32.totalorder (!%p200_p12), %s760_s11, 39 }
  0x2b   : > { %s488_s25 = sshll.u32 (!%p200_p12), %s724_s4, 6  ;;  %s380_s27 = scalar_lea.sflag (!%p200_p12), [#allocation4], %s724_s4 }
  0x2c   : > { %s768_s26 = scalar_lea.vmem (!%p200_p12), [#allocation3], %s488_s25 }
  0x2e   : > { %v260_v16 = vld [vmem:[%s727_s6 + $0x70] sm:$0xff]  ;;  %v261_v17 = vld [vmem:[%s727_s6 + $0x78] sm:$0xff]  ;;  %v258_v22 = vld [vmem:[%s727_s6 + $0x60] sm:$0xff]  ;;  %vm272_vm0 = vcmask 261120   ;;  %s236_s17 = scalar_select %p235_p13, %s760_s11, 39 }
  0x2f   : > { %v256_v18 = vld [vmem:[%s727_s6 + $0x50] sm:$0xff]  ;;  %337 = vmatpush.msra.mxu2 %v260_v16  ;;  %360 = vmatpush.msra.mxu3 %v261_v17  ;;  %v257_v19 = vld [vmem:[%s727_s6 + $0x58] sm:$0xff]  ;;  %v259_v23 = vld [vmem:[%s727_s6 + $0x68] sm:$0xff]  ;;  %s388_s28 = ssub.s32 (%p689_p6), 39, %s760_s11 }
  0x30   : > { %v252_v20 = vld [vmem:[%s727_s6 + $0x30] sm:$0xff]  ;;  %v253_v21 = vld [vmem:[%s727_s6 + $0x38] sm:$0xff]  ;;  %v254_v24 = vld [vmem:[%s727_s6 + $0x40] sm:$0xff]  ;;  %291 = vmatpush.msra.mxu0 %v258_v22  ;;  %314 = vmatpush.msra.mxu1 %v259_v23  ;;  %s237_s24 = scalar_lea.vmem %s845_s2, %s236_s17  ;;  %p389_p0 = scmp.lt.s32.totalorder (%p689_p6), %s388_s28, 4 }
  0x31   : > { %338 = vmatpush.msra.mxu2 %v256_v18  ;;  %361 = vmatpush.msra.mxu3 %v257_v19  ;;  %v255_v25 = vld [vmem:[%s727_s6 + $0x48] sm:$0xff]  ;;  %v248_v26 = vld [vmem:[%s727_s6 + $0x10] sm:$0xff]  ;;  %v249_v27 = vld [vmem:[%s727_s6 + $0x18] sm:$0xff] }
  0x32   : > { %v244_v28 = vld [vmem:[%s843_s0] sm:$0xff]  ;;  %292 = vmatpush.msra.mxu0 %v254_v24  ;;  %315 = vmatpush.msra.mxu1 %v255_v25  ;;  %v251_v30 = vld [vmem:[%s727_s6 + $0x28] sm:$0xff] }
  0x33   : > { %339 = vmatpush.msra.mxu2 %v252_v20  ;;  %362 = vmatpush.msra.mxu3 %v253_v21  ;;  %v250_v29 = vld [vmem:[%s727_s6 + $0x20] sm:$0xff]  ;;  %v247_v32 = vld [vmem:[%s727_s6 + $0x8] sm:$0xff] }
  0x34   : > { %v246_v31 = vld [vmem:[%s727_s6] sm:$0xff]  ;;  %293 = vmatpush.msra.mxu0 %v250_v29  ;;  %316 = vmatpush.msra.mxu1 %v251_v30  ;;  %v245_v33 = vld [vmem:[%s843_s0 + $0x8] sm:$0xff] }
  0x35   : > { %340 = vmatpush.msra.mxu2 %v248_v26  ;;  %363 = vmatpush.msra.mxu3 %v249_v27  ;;  %v262_v34 = vld [vmem:[%s237_s24] sm:$0xf] }
  0x36   : > { %494 = vmatmul.msk.f32.vlgmr.msra.gmra.mxu2 %vm272_vm0, %v244_v28  ;;  %496 = vmatmul.msk.f32.vlgmr.msra.gmra.mxu3 %vm272_vm0, %v244_v28  ;;  %v264_v35 = vperm.slane %v262_v34, 0  ;;  %v265_v36 = vperm.slane %v262_v34, 1  ;;  %v266_v37 = vperm.slane %v262_v34, 2  ;;  %v267_v38 = vperm.slane %v262_v34, 3 }
  0x37   : > { %294 = vmatpush.msra.mxu0 %v246_v31  ;;  %317 = vmatpush.msra.mxu1 %v247_v32 }
  0x38   : > { %490 = vmatmul.msk.f32.vlgmr.msra.gmra.mxu0 %vm272_vm0, %v244_v28  ;;  %492 = vmatmul.msk.f32.vlgmr.msra.gmra.mxu1 %vm272_vm0, %v244_v28 }
  0x3e   : > { %495 = vmatmul.msk.f32.gmra.mxu2 %vm272_vm0, %v245_v33  ;;  %497 = vmatmul.msk.f32.gmra.mxu3 %vm272_vm0, %v245_v33 }
  0x40   : > { %491 = vmatmul.msk.f32.gmra.mxu0 %vm272_vm0, %v245_v33  ;;  %493 = vmatmul.msk.f32.gmra.mxu1 %vm272_vm0, %v245_v33 }
  0xb5   : > { %v296_v39 = vpop.f32.mrf.mxu0  ;;  %v319_v40 = vpop.f32.mrf.mxu1 }
  0xb6   : > { %v297_v41 = vadd.f32 %v296_v39, %v264_v35  ;;  %v320_v42 = vadd.f32 %v319_v40, %v265_v36 }
  0xb8   : > { %371 = vst [vmem:[%s768_s26] sm:$0xff] %v297_v41 }
  0xb9   : > { %v342_v43 = vpop.f32.mrf.mxu2  ;;  %v365_v44 = vpop.f32.mrf.mxu3  ;;  %372 = vst [vmem:[%s768_s26 + $0x8] sm:$0xff] %v320_v42 }
  0xba   : > { %v343_v45 = vadd.f32 %v342_v43, %v266_v37  ;;  %v366_v46 = vadd.f32 %v365_v44, %v267_v38 }
  0xbc   : > { %373 = vst [vmem:[%s768_s26 + $0x10] sm:$0xff] %v343_v45 }
  0xbd   : > { %374 = vst [vmem:[%s768_s26 + $0x18] sm:$0xff] %v366_v46  ;;  %v299_v47 = vpop.f32.mrf.mxu0  ;;  %v322_v48 = vpop.f32.mrf.mxu1 }
  0xbe   : > { %v300_v49 = vadd.f32 %v299_v47, %v264_v35  ;;  %v323_v50 = vadd.f32 %v322_v48, %v265_v36 }
  0xc0   : > { %375 = vst [vmem:[%s768_s26 + $0x20] sm:$0xff] %v300_v49 }
  0xc1   : > { %v345_v51 = vpop.f32.mrf.mxu2  ;;  %v368_v52 = vpop.f32.mrf.mxu3  ;;  %376 = vst [vmem:[%s768_s26 + $0x28] sm:$0xff] %v323_v50  ;;  %386 = sbr.rel (!%p689_p6) target bundleno = 230 (0xe6), region = 59 }
  0xc2   : > { %v346_v53 = vadd.f32 %v345_v51, %v266_v37  ;;  %v369_v54 = vadd.f32 %v368_v52, %v267_v38 }
  0xc4   : > { %377 = vst [vmem:[%s768_s26 + $0x30] sm:$0xff] %v346_v53 }
  0xc5   : > { %378 = vst [vmem:[%s768_s26 + $0x38] sm:$0xff] %v369_v54 }
  0xc6   : > { %s855_s28 = smov (!%p389_p0, %s388_s28), 4 }
  0xc7   : > { %s500_s29 = sshll.u32 %s855_s28, 4 }
  0xc8   : > { %s392_s30 = ssub.s32 64, %s500_s29 }
  0xc9   : > { %s393_s5 = sshll.u32 %s392_s30, 4 }
  0xca   : > { %394 = vsyncadd %s380_s27, %s393_s5  ;;  %p787_p1 = scmp.ne.s32.totalorder %s500_s29, 0  ;;  %s509_s6 = sshll.u32 %s671_s16, 5 }
  0xcb   : > { %s397_s9 = scalar_lea.hbm %s846_s3, %s509_s6  ;;  %s503_s10 = sshll.u32 %s855_s28, 3 }
  0xcc   : > { %s400_s11 = sshll.u32 %s768_s26, 4  ;;  %s402_s17 = sshll.u32 %s397_s9, 4  ;;  %s797_s11 = int_to_ptr.vmem [resolvable:$true] %s400_s11  ;;  %s799_s17 = int_to_ptr.hbm [resolvable:$true] %s402_s17 }
  0xcd   : > { %s511_s19 = sshll.u32 %s855_s28, 8  ;;  %s552_s20 = sshra.s32 %s797_s11, 4  ;;  %s553_s20 = int_to_ptr.vmem [resolvable:$true] %s552_s20 }
  0xce   : > { %s554_s24 = sshrl.u32 %s511_s19, 4  ;;  %s627_s16 = smov [#allocation3]  }
  0xcf   : > { %s559_s25 = scalar_lea.vmem %s553_s20, %s554_s24  ;;  %s563_s29 = scalar_lea.vmem %s627_s16, 128 }
  0xd0   : > { %p560_p2 = scmp.ne.s32.totalorder %s553_s20, %s559_s25  ;;  %p565_p5 = scmp.lt.s32.totalorder %s563_s29, %s559_s25 }
  0xd2   : > { %p561_p3 = pnand %p560_p2, %p787_p1 }
  0xd4   : > { %p562_p4 = pneg %p561_p3 }
  0xd6   : > { %p567_p6 = pnand %p565_p5, %p562_p4 }
  0xd8   : > { %570 = shalt.err (!%p567_p6)
}
  0xd9   : > { %s571_s26 = sshra.s32 %s799_s17, 4  ;;  %s582_s7 = scalar_lea.hbm %s846_s3, 624  ;;  %s572_s26 = int_to_ptr.hbm [resolvable:$true] %s571_s26 }
  0xda   : > { %s578_s30 = scalar_lea.hbm %s572_s26, %s554_s24  ;;  %p583_p11 = scmp.lt.s32.totalorder %s572_s26, %s846_s3 }
  0xdb   : > { %p579_p7 = scmp.ne.s32.totalorder %s572_s26, %s578_s30  ;;  %p584_p12 = scmp.lt.s32.totalorder %s582_s7, %s578_s30 }
  0xdd   : > { %p580_p9 = pnand %p579_p7, %p787_p1  ;;  %p585_p13 = por %p584_p12, %p583_p11 }
  0xdf   : > { %p581_p10 = pneg %p580_p9 }
  0xe1   : > { %p586_p0 = pnand %p585_p13, %p581_p10 }
  0xe3   : > { %589 = shalt.err (!%p586_p0)
}
  0xe4   : > { %s628_s20 = smov 512   ;;  %s629_s24 = smov 4992  }
  0xe5   : > { %408 = dma.vmem_to_hbm [thread:$0]  (%p787_p1), %s797_s11, %s511_s19, %s799_s17, %s380_s27, %s628_s20, %s629_s24, %s503_s10  }
  0xe6 PF: > { %p517_p2 = scmp.ge.s32.totalorder %s625_s15, 2  ;;  %s417_s25 = sand.u32 1, %s613_s12  }
  0xe7   : > { %s418_s16 = scalar_lea.sflag [#allocation4], %s417_s25 }
  0xe8   : > { %p514_p3 = pnand %p517_p2, %p693_p8 }
  0xea   : > { %p515_p4 = pneg %p514_p3 }
  0xec   : > { %608 = dma.done.wait (%p515_p4), %s418_s16, 1024  }
  0xed   : > { %610 = vsyncadd (%p515_p4), %s418_s16, 4294966272  ;;  %p13_p5 = scmp.ge.s32.totalorder %s675_s18, 12   ;;  %s850_s12 = smov %s617_s13 }
  0xee   : > { %s851_s13 = smov %s621_s14  ;;  %s852_s14 = smov %s687_s21 }
  0xef   : > { %s853_s15 = smov %s675_s18  ;;  %15 = sbr.rel (!%p13_p5) target bundleno = 3 (0x3), region = 98 }
  0xf4   :  { %424 = vsyncpa [#allocation4], 1 }
  0xf5   :  { %426 = vsyncpa [#allocation4 + $0x1], 1 }

// kernel: qgen_forward.2
= control target key start
LH: loop header
LB: loop body
LE: loop exit
PB: predicated region body
PF: predicated region fallthrough
CT: control target
= control target key end

     0   :  { %vm105_vm0 = vcmask 261120   ;;  %vm45_vm1 = vcmask 523264   ;;  %vm76_vm2 = vcmask 130048   ;;  %vm391_vm7 = vcmask 254976   ;;  %s1275_s2 = inlined_call_operand.vmem [shape: f32[64,16], index: 2, kind: input, shape index: {}]   ;;  %s1276_s4 = inlined_call_operand.vmem [shape: f32[32,128], index: 4, kind: input, shape index: {}]   ;;  %s1277_s0 = inlined_call_operand.vmem [shape: f32[8,2,32], index: 0, kind: input, shape index: {}]   ;;  %s1278_s3 = inlined_call_operand.vmem [shape: f32[1,16], index: 3, kind: input, shape index: {}]   ;;  %s1279_s1 = inlined_call_operand.vmem [shape: f32[2,64], index: 1, kind: input, shape index: {}]   ;;  %s1280_s8 = inlined_call_operand.vmem [shape: f32[32,128], index: 8, kind: input, shape index: {}]   ;;  %s1281_s6 = inlined_call_operand.vmem [shape: f32[1,128], index: 6, kind: input, shape index: {}]   ;;  %s1282_s5 = inlined_call_operand.vmem [shape: f32[16,128], index: 5, kind: input, shape index: {}]   ;;  %s1283_s7 = inlined_call_operand.vmem [shape: f32[2,32], index: 7, kind: input, shape index: {}]   ;;  %s1284_s9 = inlined_call_operand.vmem [shape: f32[8,2,32], index: 9, kind: output, shape index: {}]  }
   0x1   :  { %v40_v0 = vld [vmem:[%s1275_s2 + $0x38] sm:$0xff]  ;;  %v39_v1 = vld [vmem:[%s1275_s2 + $0x30] sm:$0xff]  ;;  %v38_v2 = vld [vmem:[%s1275_s2 + $0x28] sm:$0xff] }
   0x2   :  { %57 = vmatpush.msra.mxu0 %v40_v0  ;;  %v1037_v3 = vld [vmem:[%s1276_s4 + $0x18] sm:$0xff]  ;;  %v1042_v4 = vld [vmem:[%s1276_s4 + $0x10] sm:$0xff]  ;;  %v37_v5 = vld [vmem:[%s1275_s2 + $0x20] sm:$0xff] }
   0x3   :  { %121 = vmatpush.msra.mxu2 %v1037_v3  ;;  %147 = vmatpush.msra.mxu3 %v1037_v3  ;;  %v1052_v6 = vld [vmem:[%s1276_s4 + $0x8] sm:$0xff]  ;;  %v36_v7 = vld [vmem:[%s1275_s2 + $0x18] sm:$0xff]  ;;  %v1062_v8 = vld [vmem:[%s1276_s4] sm:$0xff] }
   0x4   :  { %58 = vmatpush.msra.mxu0 %v39_v1  ;;  %v35_v9 = vld [vmem:[%s1275_s2 + $0x10] sm:$0xff]  ;;  %v104_v10 = vld [vmem:[%s1277_s0] sm:$0x3]  ;;  %v876_v11 = vld [vmem:[%s1277_s0 + $0x2] sm:$0x3] }
   0x5   :  { %122 = vmatpush.msra.mxu2 %v1042_v4  ;;  %148 = vmatpush.msra.mxu3 %v1042_v4  ;;  %v34_v12 = vld [vmem:[%s1275_s2 + $0x8] sm:$0xff]  ;;  %v33_v13 = vld [vmem:[%s1275_s2] sm:$0xff]  ;;  %v1105_v17 = vld [vmem:[%s1280_s8 + $0x18] sm:$0xff] }
   0x6   :  { %59 = vmatpush.msra.mxu0 %v38_v2  ;;  %v32_v14 = vld [vmem:[%s1279_s1] sm:$0x3]  ;;  %v880_v15 = vld [vmem:[%s1277_s0 + $0x6] sm:$0x3]  ;;  %v882_v16 = vld [vmem:[%s1277_s0 + $0x8] sm:$0x3] }
   0x7   :  { %123 = vmatpush.msra.mxu2 %v1052_v6  ;;  %149 = vmatpush.msra.mxu3 %v1052_v6  ;;  %v1114_v18 = vld [vmem:[%s1280_s8 + $0x10] sm:$0xff]  ;;  %v1122_v19 = vld [vmem:[%s1280_s8 + $0x8] sm:$0xff]  ;;  %v319_v22 = vld [vmem:[%s1280_s8] sm:$0xff] }
   0x8   :  { %60 = vmatpush.msra.mxu0 %v37_v5  ;;  %v886_v20 = vld [vmem:[%s1277_s0 + $0xc] sm:$0x3]  ;;  %v888_v21 = vld [vmem:[%s1277_s0 + $0xe] sm:$0x3]  ;;  %v323_v24 = vld [vmem:[%s1283_s7] sm:$0x3] }
   0x9   :  { %124 = vmatpush.msra.mxu2 %v1062_v8  ;;  %150 = vmatpush.msra.mxu3 %v1062_v8  ;;  %v71_v23 = vld [vmem:[%s1282_s5 + $0x8] sm:$0xff]  ;;  %v70_v25 = vld [vmem:[%s1282_s5] sm:$0xff] }
   0xa   :  { %61 = vmatpush.msra.mxu0 %v36_v7  ;;  %875 = vmatmul.msk.f32.vlgmr.msra.gmra.mxu2 %vm105_vm0, %v104_v10  ;;  %v907_v26 = vld [vmem:[%s1278_s3] ss:$0 sm:$0xff]  ;;  %v878_v33 = vld [vmem:[%s1277_s0 + $0x4] sm:$0x3]  ;;  %v884_v37 = vld [vmem:[%s1277_s0 + $0xa] sm:$0x3] }
   0xb   :  { %201 = vmatpush.msrb.mxu2 %v1037_v3  ;;  %877 = vmatmul.msk.f32.vlgmr.msra.gmra.mxu3 %vm105_vm0, %v876_v11  ;;  %v908_v38 = vld [vmem:[%s1281_s6] ss:$0 sm:$0xff]  ;;  %s973_s0 = smov 64   ;;  %s974_s6 = smov 32  }
   0xc   :  { %62 = vmatpush.msra.mxu0 %v35_v9  ;;  %228 = vmatpush.msrb.mxu3 %v1037_v3 }
   0xd   :  { %202 = vmatpush.msrb.mxu2 %v1042_v4  ;;  %94 = vmatpush.msra.mxu1 %v71_v23 }
   0xe   :  { %63 = vmatpush.msra.mxu0 %v34_v12  ;;  %229 = vmatpush.msrb.mxu3 %v1042_v4 }
   0xf   :  { %203 = vmatpush.msrb.mxu2 %v1052_v6  ;;  %95 = vmatpush.msra.mxu1 %v70_v25 }
  0x10   :  { %64 = vmatpush.msra.mxu0 %v33_v13  ;;  %230 = vmatpush.msrb.mxu3 %v1052_v6 }
  0x11   :  { %873 = vmatmul.msk.f32.vlgmr.msra.gmra.mxu0 %vm45_vm1, %v32_v14  ;;  %204 = vmatpush.msrb.mxu2 %v1062_v8 }
  0x12   :  { %282 = vmatpush.msrb.mxu0 %v1037_v3  ;;  %881 = vmatmul.msk.f32.vlgmr.msrb.gmra.mxu2 %vm105_vm0, %v880_v15 }
  0x13   :  { %231 = vmatpush.msrb.mxu3 %v1062_v8  ;;  %309 = vmatpush.msra.mxu2 %v1037_v3 }
  0x14   :  { %883 = vmatmul.msk.f32.vlgmr.msrb.gmra.mxu3 %vm105_vm0, %v882_v16  ;;  %283 = vmatpush.msrb.mxu0 %v1042_v4 }
  0x15   :  { %341 = vmatpush.msra.mxu3 %v1105_v17  ;;  %310 = vmatpush.msra.mxu2 %v1042_v4 }
  0x16   :  { %284 = vmatpush.msrb.mxu0 %v1052_v6  ;;  %174 = vmatpush.msrb.mxu1 %v1037_v3 }
  0x17   :  { %342 = vmatpush.msra.mxu3 %v1114_v18  ;;  %311 = vmatpush.msra.mxu2 %v1052_v6 }
  0x18   :  { %285 = vmatpush.msrb.mxu0 %v1062_v8  ;;  %175 = vmatpush.msrb.mxu1 %v1042_v4 }
  0x19   :  { %343 = vmatpush.msra.mxu3 %v1122_v19  ;;  %312 = vmatpush.msra.mxu2 %v1062_v8 }
  0x1a   :  { %887 = vmatmul.msk.f32.vlgmr.msrb.gmra.mxu0 %vm105_vm0, %v886_v20  ;;  %889 = vmatmul.msk.f32.vlgmr.msra.gmra.mxu2 %vm105_vm0, %v888_v21 }
  0x1b   :  { %477 = vmatpush.msra.mxu0 %v1105_v17  ;;  %545 = vmatpush.msrb.mxu2 %v1105_v17 }
  0x1c   :  { %344 = vmatpush.msra.mxu3 %v319_v22  ;;  %176 = vmatpush.msrb.mxu1 %v1052_v6 }
  0x1d   :  { %478 = vmatpush.msra.mxu0 %v1114_v18  ;;  %546 = vmatpush.msrb.mxu2 %v1114_v18 }
  0x1e   :  { %890 = vmatmul.msk.f32.vlgmr.msra.gmra.mxu3 %vm105_vm0, %v323_v24  ;;  %177 = vmatpush.msrb.mxu1 %v1062_v8 }
  0x1f   :  { %479 = vmatpush.msra.mxu0 %v1122_v19  ;;  %547 = vmatpush.msrb.mxu2 %v1122_v19 }
  0x20   :  { %613 = vmatpush.msrb.mxu3 %v1105_v17 }
  0x21   :  { %480 = vmatpush.msra.mxu0 %v319_v22  ;;  %548 = vmatpush.msrb.mxu2 %v319_v22 }
  0x22   :  { %614 = vmatpush.msrb.mxu3 %v1114_v18 }
  0x23   :  { %749 = vmatpush.msrb.mxu0 %v1105_v17  ;;  %817 = vmatpush.msra.mxu2 %v1105_v17 }
  0x24   :  { %615 = vmatpush.msrb.mxu3 %v1122_v19 }
  0x25   :  { %750 = vmatpush.msrb.mxu0 %v1114_v18  ;;  %818 = vmatpush.msra.mxu2 %v1114_v18 }
  0x26   :  { %616 = vmatpush.msrb.mxu3 %v319_v22 }
  0x27   :  { %751 = vmatpush.msrb.mxu0 %v1122_v19  ;;  %819 = vmatpush.msra.mxu2 %v1122_v19 }
  0x29   :  { %752 = vmatpush.msrb.mxu0 %v319_v22  ;;  %820 = vmatpush.msra.mxu2 %v319_v22 }
  0x8d   :  { %v126_v29 = vpop.f32.mrf.mxu2 }
  0x8e   :  { %v66_v27 = vpop.f32.mrf.mxu0  ;;  %129 = vst [vmem:[#allocation2] sm:$0x3] %v126_v29  ;;  %v152_v30 = vpop.f32.mrf.mxu3 }
  0x8f   :  { %v67_v28 = vadd.f32 %v907_v26, %v66_v27  ;;  %156 = vst [vmem:[#allocation2 + $0x2] sm:$0x3] %v152_v30 }
  0x91   :  { %v69_v31 = vmax.f32 %v67_v28, 0.0 }
  0x93   :  { %874 = vmatmul.msk.f32.vlgmr.msra.gmra.mxu1 %vm76_vm2, %v69_v31 }
  0x94   :  { %255 = vmatpush.msra.mxu1 %v1037_v3 }
  0x95   :  { %v206_v32 = vpop.f32.mrf.mxu2  ;;  %v324_v40 = vld [vmem:[#allocation2] sm:$0x3] }
  0x96   :  { %256 = vmatpush.msra.mxu1 %v1042_v4  ;;  %210 = vst [vmem:[#allocation2 + $0x6] sm:$0x3] %v206_v32  ;;  %v393_v7 = vld [vmem:[#allocation2 + $0x2] sm:$0x3] }
  0x97   :  { %v233_v34 = vpop.f32.mrf.mxu3  ;;  %v287_v35 = vpop.f32.mrf.mxu0 }
  0x98   :  { %257 = vmatpush.msra.mxu1 %v1052_v6  ;;  %237 = vst [vmem:[#allocation2 + $0x8] sm:$0x3] %v233_v34 }
  0x99   :  { %291 = vst [vmem:[#allocation2 + $0xc] sm:$0x3] %v287_v35 }
  0x9a   :  { %258 = vmatpush.msra.mxu1 %v1062_v8 }
  0x9b   :  { %879 = vmatmul.msk.f32.vlgmr.msrb.gmra.mxu1 %vm105_vm0, %v878_v33 }
  0x9c   :  { %409 = vmatpush.msrb.mxu1 %v1105_v17 }
  0x9d   :  { %v314_v36 = vpop.f32.mrf.mxu2 }
  0x9e   :  { %410 = vmatpush.msrb.mxu1 %v1114_v18  ;;  %318 = vst [vmem:[#allocation2 + $0xe] sm:$0x3] %v314_v36 }
  0xa0   :  { %411 = vmatpush.msrb.mxu1 %v1122_v19 }
  0xa1   :  { %v346_v42 = vpop.f32.mrf.mxu3 }
  0xa2   :  { %412 = vmatpush.msrb.mxu1 %v319_v22 }
  0xa3   :  { %885 = vmatmul.msk.f32.vlgmr.msra.gmra.mxu1 %vm105_vm0, %v884_v37 }
  0xa4   :  { %681 = vmatpush.msra.mxu1 %v1105_v17 }
  0xa6   :  { %682 = vmatpush.msra.mxu1 %v1114_v18 }
  0xa8   :  { %683 = vmatpush.msra.mxu1 %v1122_v19 }
  0xaa   :  { %684 = vmatpush.msra.mxu1 %v319_v22 }
 0x110   :  { %v97_v39 = vpop.f32.mrf.mxu1 }
 0x111   :  { %v1194_v41 = vadd.f32 %v908_v38, %v97_v39 }
 0x113   :  { %v325_v43 = vadd.f32 %v324_v40, %v1194_v41  ;;  %v394_v8 = vadd.f32 %v393_v7, %v1194_v41 }
 0x115   :  { %v349_v44 = vadd.f32 %v346_v42, %v325_v43 }
 0x117   :  { %909 = vtanh.f32 %v349_v44  ;;  %v350_v48 = vsub.f32 0.0, %v349_v44 }
 0x118   :  { %v179_v45 = vpop.f32.mrf.mxu1 }
 0x119   :  { %183 = vst [vmem:[#allocation2 + $0x4] sm:$0x3] %v179_v45  ;;  %v351_v49 = vmul.f32 1.442695, %v350_v48 }
 0x11b   :  { %911 = vpow2.f32 %v351_v49 }
 0x11d   :  { %v910_v46 = vpop.eup %909 }
 0x11e   :  { %372 = vrot.lane.b32.xlu0 %v910_v46, %s973_s0 }
 0x120   :  { %v260_v47 = vpop.f32.mrf.mxu1  ;;  %v461_v35 = vld [vmem:[#allocation2 + $0x4] sm:$0x3] }
 0x121   :  { %264 = vst [vmem:[#allocation2 + $0xa] sm:$0x3] %v260_v47  ;;  %v912_v50 = vpop.eup %911  ;;  %v462_v36 = vadd.f32 %v461_v35, %v1194_v41 }
 0x122   :  { %v353_v51 = vadd.f32 1.0, %v912_v50 }
 0x124   :  { %913 = vrcp.f32 %v353_v51  ;;  %v365_v57 = vand.u32 2147483648, %v353_v51  ;;  %vm359_vm4 = vweird.f32 %v353_v51  ;;  %v363_v58 = vand.u32 2147483647, %v353_v51 }
 0x126   :  { %v366_v60 = vor.u32 1.1754944e-38, %v365_v57  ;;  %vm364_vm6 = vcmp.eq.f32.partialorder %v363_v58, 8.507059e+37 }
 0x12a   :  { %v914_v52 = vpop.eup %913 }
 0x12b   :  { %v355_v53 = vmul.f32 %v914_v52, %v353_v51  ;;  %vm360_vm3 = vweird.f32 %v914_v52 }
 0x12c   :  { %vm361_vm5 = vmor %vm359_vm4, %vm360_vm3 }
 0x12d   :  { %v356_v54 = vsub.f32 1.0, %v355_v53 }
 0x12f   :  { %v357_v55 = vmul.f32 %v914_v52, %v356_v54 }
 0x131   :  { %v358_v56 = vadd.f32 %v914_v52, %v357_v55 }
 0x133   :  { %v362_v59 = vsel %vm361_vm5, %v914_v52, %v358_v56 }
 0x134   :  { %v367_v62 = vsel %vm364_vm6, %v366_v60, %v362_v59 }
 0x135   :  { %v370_v0 = vmul.f32 0.0, %v367_v62 }
 0x190   :  { %v373_v61 = vpop.permute.xlu0 %372 }
 0x191   :  { %v375_v63 = vmul.f32 %v373_v61, %v367_v62 }
 0x193   :  { %377 = vrot.lane.b32.xlu0 %v375_v63, %s974_s6 }
 0x205   :  { %v378_v1 = vpop.permute.xlu0 %377 }
 0x206   :  { %v380_v2 = vadd.f32 %v378_v1, %v370_v0  ;;  %v529_v0 = vld [vmem:[#allocation2 + $0x6] sm:$0x3] }
 0x207   :  { %v530_v1 = vadd.f32 %v529_v0, %v1194_v41 }
 0x208   :  { %915 = vtanh.f32 %v380_v2 }
 0x20e   :  { %v916_v3 = vpop.eup %915 }
 0x20f   :  { %383 = vrot.lane.b32.xlu1 %v916_v3, %s973_s0 }
 0x281   :  { %v384_v4 = vpop.permute.xlu1 %383 }
 0x282   :  { %v386_v5 = vmul.f32 %v384_v4, %v367_v62 }
 0x284   :  { %388 = vrot.lane.b32.xlu1 %v386_v5, %s974_s6 }
 0x2f6   :  { %v389_v6 = vpop.permute.xlu1 %388 }
 0x2f7   :  { %392 = vst.msk [vmem:[%s1284_s9] sm:$0x3] %vm391_vm7, %v389_v6  ;;  %891 = vmatmul.msk.f32.vlgmr.msrb.gmra.mxu1 %vm105_vm0, %v389_v6 }
 0x374   :  { %v414_v9 = vpop.f32.mrf.mxu1 }
 0x375   :  { %v417_v10 = vadd.f32 %v414_v9, %v394_v8 }
 0x377   :  { %917 = vtanh.f32 %v417_v10  ;;  %v418_v12 = vsub.f32 0.0, %v417_v10 }
 0x379   :  { %v419_v13 = vmul.f32 1.442695, %v418_v12 }
 0x37b   :  { %919 = vpow2.f32 %v419_v13 }
 0x37d   :  { %v918_v11 = vpop.eup %917 }
 0x37e   :  { %440 = vrot.lane.b32.xlu2 %v918_v11, %s973_s0 }
 0x381   :  { %v920_v14 = vpop.eup %919 }
 0x382   :  { %v421_v15 = vadd.f32 1.0, %v920_v14 }
 0x384   :  { %921 = vrcp.f32 %v421_v15  ;;  %v433_v21 = vand.u32 2147483648, %v421_v15  ;;  %vm427_vm9 = vweird.f32 %v421_v15  ;;  %v431_v22 = vand.u32 2147483647, %v421_v15 }
 0x386   :  { %v434_v24 = vor.u32 1.1754944e-38, %v433_v21  ;;  %vm432_vm11 = vcmp.eq.f32.partialorder %v431_v22, 8.507059e+37 }
 0x38a   :  { %v922_v16 = vpop.eup %921 }
 0x38b   :  { %v423_v17 = vmul.f32 %v922_v16, %v421_v15  ;;  %vm428_vm8 = vweird.f32 %v922_v16 }
 0x38c   :  { %vm429_vm10 = vmor %vm427_vm9, %vm428_vm8 }
 0x38d   :  { %v424_v18 = vsub.f32 1.0, %v423_v17 }
 0x38f   :  { %v425_v19 = vmul.f32 %v922_v16, %v424_v18 }
 0x391   :  { %v426_v20 = vadd.f32 %v922_v16, %v425_v19 }
 0x393   :  { %v430_v23 = vsel %vm429_vm10, %v922_v16, %v426_v20 }
 0x394   :  { %v435_v26 = vsel %vm432_vm11, %v434_v24, %v430_v23 }
 0x395   :  { %v438_v28 = vmul.f32 %v435_v26, %v380_v2 }
 0x3d8   :  { %v441_v25 = vpop.permute.xlu2 %440 }
 0x3d9   :  { %v443_v27 = vmul.f32 %v441_v25, %v435_v26 }
 0x3db   :  { %445 = vrot.lane.b32.xlu2 %v443_v27, %s974_s6 }
 0x435   :  { %v446_v29 = vpop.permute.xlu2 %445 }
 0x436   :  { %v448_v30 = vadd.f32 %v446_v29, %v438_v28  ;;  %v597_v28 = vld [vmem:[#allocation2 + $0x8] sm:$0x3] }
 0x437   :  { %v598_v29 = vadd.f32 %v597_v28, %v1194_v41 }
 0x438   :  { %923 = vtanh.f32 %v448_v30 }
 0x43e   :  { %v924_v31 = vpop.eup %923 }
 0x43f   :  { %451 = vrot.lane.b32.xlu0 %v924_v31, %s973_s0 }
 0x4b1   :  { %v452_v32 = vpop.permute.xlu0 %451 }
 0x4b2   :  { %v454_v33 = vmul.f32 %v452_v32, %v435_v26 }
 0x4b4   :  { %456 = vrot.lane.b32.xlu1 %v454_v33, %s974_s6 }
 0x526   :  { %v457_v34 = vpop.permute.xlu1 %456 }
 0x527   :  { %892 = vst.msk [vmem:[%s1284_s9 + $0x2] sm:$0x3] %vm391_vm7, %v457_v34  ;;  %893 = vmatmul.msk.f32.vlgmr.msra.gmra.mxu0 %vm105_vm0, %v457_v34 }
 0x5a4   :  { %v482_v37 = vpop.f32.mrf.mxu0 }
 0x5a5   :  { %v485_v38 = vadd.f32 %v482_v37, %v462_v36 }
 0x5a7   :  { %925 = vtanh.f32 %v485_v38  ;;  %v486_v40 = vsub.f32 0.0, %v485_v38 }
 0x5a9   :  { %v487_v42 = vmul.f32 1.442695, %v486_v40 }
 0x5ab   :  { %927 = vpow2.f32 %v487_v42 }
 0x5ad   :  { %v926_v39 = vpop.eup %925 }
 0x5ae   :  { %508 = vrot.lane.b32.xlu2 %v926_v39, %s973_s0 }
 0x5b1   :  { %v928_v43 = vpop.eup %927 }
 0x5b2   :  { %v489_v44 = vadd.f32 1.0, %v928_v43 }
 0x5b4   :  { %929 = vrcp.f32 %v489_v44  ;;  %v501_v50 = vand.u32 2147483648, %v489_v44  ;;  %vm495_vm13 = vweird.f32 %v489_v44  ;;  %v499_v51 = vand.u32 2147483647, %v489_v44 }
 0x5b6   :  { %v502_v53 = vor.u32 1.1754944e-38, %v501_v50  ;;  %vm500_vm15 = vcmp.eq.f32.partialorder %v499_v51, 8.507059e+37 }
 0x5ba   :  { %v930_v45 = vpop.eup %929 }
 0x5bb   :  { %v491_v46 = vmul.f32 %v930_v45, %v489_v44  ;;  %vm496_vm12 = vweird.f32 %v930_v45 }
 0x5bc   :  { %vm497_vm14 = vmor %vm495_vm13, %vm496_vm12 }
 0x5bd   :  { %v492_v47 = vsub.f32 1.0, %v491_v46 }
 0x5bf   :  { %v493_v48 = vmul.f32 %v930_v45, %v492_v47 }
 0x5c1   :  { %v494_v49 = vadd.f32 %v930_v45, %v493_v48 }
 0x5c3   :  { %v498_v52 = vsel %vm497_vm14, %v930_v45, %v494_v49 }
 0x5c4   :  { %v503_v55 = vsel %vm500_vm15, %v502_v53, %v498_v52 }
 0x5c5   :  { %v506_v57 = vmul.f32 %v503_v55, %v448_v30 }
 0x608   :  { %v509_v54 = vpop.permute.xlu2 %508 }
 0x609   :  { %v511_v56 = vmul.f32 %v509_v54, %v503_v55 }
 0x60b   :  { %513 = vrot.lane.b32.xlu0 %v511_v56, %s974_s6 }
 0x67d   :  { %v514_v58 = vpop.permute.xlu0 %513 }
 0x67e   :  { %v516_v59 = vadd.f32 %v514_v58, %v506_v57  ;;  %v665_v57 = vld [vmem:[#allocation2 + $0xa] sm:$0x3] }
 0x67f   :  { %v666_v58 = vadd.f32 %v665_v57, %v1194_v41 }
 0x680   :  { %931 = vtanh.f32 %v516_v59 }
 0x686   :  { %v932_v60 = vpop.eup %931 }
 0x687   :  { %519 = vrot.lane.b32.xlu1 %v932_v60, %s973_s0 }
 0x6f9   :  { %v520_v61 = vpop.permute.xlu1 %519 }
 0x6fa   :  { %v522_v62 = vmul.f32 %v520_v61, %v503_v55 }
 0x6fc   :  { %524 = vrot.lane.b32.xlu2 %v522_v62, %s974_s6 }
 0x756   :  { %v525_v63 = vpop.permute.xlu2 %524 }
 0x757   :  { %894 = vst.msk [vmem:[%s1284_s9 + $0x4] sm:$0x3] %vm391_vm7, %v525_v63  ;;  %895 = vmatmul.msk.f32.vlgmr.msrb.gmra.mxu2 %vm105_vm0, %v525_v63 }
 0x7da   :  { %v550_v2 = vpop.f32.mrf.mxu2 }
 0x7db   :  { %v553_v3 = vadd.f32 %v550_v2, %v530_v1 }
 0x7dd   :  { %933 = vtanh.f32 %v553_v3  ;;  %v554_v5 = vsub.f32 0.0, %v553_v3 }
 0x7df   :  { %v555_v6 = vmul.f32 1.442695, %v554_v5 }
 0x7e1   :  { %935 = vpow2.f32 %v555_v6 }
 0x7e3   :  { %v934_v4 = vpop.eup %933 }
 0x7e4   :  { %576 = vrot.lane.b32.xlu0 %v934_v4, %s973_s0 }
 0x7e7   :  { %v936_v7 = vpop.eup %935 }
 0x7e8   :  { %v557_v8 = vadd.f32 1.0, %v936_v7 }
 0x7ea   :  { %937 = vrcp.f32 %v557_v8  ;;  %v569_v14 = vand.u32 2147483648, %v557_v8  ;;  %vm563_vm2 = vweird.f32 %v557_v8  ;;  %v567_v15 = vand.u32 2147483647, %v557_v8 }
 0x7ec   :  { %v570_v17 = vor.u32 1.1754944e-38, %v569_v14  ;;  %vm568_vm4 = vcmp.eq.f32.partialorder %v567_v15, 8.507059e+37 }
 0x7f0   :  { %v938_v9 = vpop.eup %937 }
 0x7f1   :  { %v559_v10 = vmul.f32 %v938_v9, %v557_v8  ;;  %vm564_vm1 = vweird.f32 %v938_v9 }
 0x7f2   :  { %vm565_vm3 = vmor %vm563_vm2, %vm564_vm1 }
 0x7f3   :  { %v560_v11 = vsub.f32 1.0, %v559_v10 }
 0x7f5   :  { %v561_v12 = vmul.f32 %v938_v9, %v560_v11 }
 0x7f7   :  { %v562_v13 = vadd.f32 %v938_v9, %v561_v12 }
 0x7f9   :  { %v566_v16 = vsel %vm565_vm3, %v938_v9, %v562_v13 }
 0x7fa   :  { %v571_v19 = vsel %vm568_vm4, %v570_v17, %v566_v16 }
 0x7fb   :  { %v574_v21 = vmul.f32 %v571_v19, %v516_v59 }
 0x856   :  { %v577_v18 = vpop.permute.xlu0 %576 }
 0x857   :  { %v579_v20 = vmul.f32 %v577_v18, %v571_v19 }
 0x859   :  { %581 = vrot.lane.b32.xlu1 %v579_v20, %s974_s6 }
 0x8cb   :  { %v582_v22 = vpop.permute.xlu1 %581 }
 0x8cc   :  { %v584_v23 = vadd.f32 %v582_v22, %v574_v21  ;;  %v733_v21 = vld [vmem:[#allocation2 + $0xc] sm:$0x3] }
 0x8cd   :  { %v734_v22 = vadd.f32 %v733_v21, %v1194_v41 }
 0x8ce   :  { %939 = vtanh.f32 %v584_v23 }
 0x8d4   :  { %v940_v24 = vpop.eup %939 }
 0x8d5   :  { %587 = vrot.lane.b32.xlu2 %v940_v24, %s973_s0 }
 0x92f   :  { %v588_v25 = vpop.permute.xlu2 %587 }
 0x930   :  { %v590_v26 = vmul.f32 %v588_v25, %v571_v19 }
 0x932   :  { %592 = vrot.lane.b32.xlu0 %v590_v26, %s974_s6 }
 0x9a4   :  { %v593_v27 = vpop.permute.xlu0 %592 }
 0x9a5   :  { %896 = vst.msk [vmem:[%s1284_s9 + $0x6] sm:$0x3] %vm391_vm7, %v593_v27  ;;  %897 = vmatmul.msk.f32.vlgmr.msrb.gmra.mxu3 %vm105_vm0, %v593_v27 }
 0xa28   :  { %v618_v30 = vpop.f32.mrf.mxu3 }
 0xa29   :  { %v621_v31 = vadd.f32 %v618_v30, %v598_v29 }
 0xa2b   :  { %941 = vtanh.f32 %v621_v31  ;;  %v622_v33 = vsub.f32 0.0, %v621_v31 }
 0xa2d   :  { %v623_v34 = vmul.f32 1.442695, %v622_v33 }
 0xa2f   :  { %943 = vpow2.f32 %v623_v34 }
 0xa31   :  { %v942_v32 = vpop.eup %941 }
 0xa32   :  { %644 = vrot.lane.b32.xlu1 %v942_v32, %s973_s0 }
 0xa35   :  { %v944_v35 = vpop.eup %943 }
 0xa36   :  { %v625_v36 = vadd.f32 1.0, %v944_v35 }
 0xa38   :  { %945 = vrcp.f32 %v625_v36  ;;  %v637_v43 = vand.u32 2147483648, %v625_v36  ;;  %vm631_vm6 = vweird.f32 %v625_v36  ;;  %v635_v44 = vand.u32 2147483647, %v625_v36 }
 0xa3a   :  { %v638_v46 = vor.u32 1.1754944e-38, %v637_v43  ;;  %vm636_vm9 = vcmp.eq.f32.partialorder %v635_v44, 8.507059e+37 }
 0xa3e   :  { %v946_v37 = vpop.eup %945 }
 0xa3f   :  { %v627_v38 = vmul.f32 %v946_v37, %v625_v36  ;;  %vm632_vm5 = vweird.f32 %v946_v37 }
 0xa40   :  { %vm633_vm8 = vmor %vm631_vm6, %vm632_vm5 }
 0xa41   :  { %v628_v39 = vsub.f32 1.0, %v627_v38 }
 0xa43   :  { %v629_v40 = vmul.f32 %v946_v37, %v628_v39 }
 0xa45   :  { %v630_v42 = vadd.f32 %v946_v37, %v629_v40 }
 0xa47   :  { %v634_v45 = vsel %vm633_vm8, %v946_v37, %v630_v42 }
 0xa48   :  { %v639_v48 = vsel %vm636_vm9, %v638_v46, %v634_v45 }
 0xa49   :  { %v642_v50 = vmul.f32 %v639_v48, %v584_v23 }
 0xaa4   :  { %v645_v47 = vpop.permute.xlu1 %644 }
 0xaa5   :  { %v647_v49 = vmul.f32 %v645_v47, %v639_v48 }
 0xaa7   :  { %649 = vrot.lane.b32.xlu2 %v647_v49, %s974_s6 }
 0xb01   :  { %v650_v51 = vpop.permute.xlu2 %649 }
 0xb02   :  { %v652_v52 = vadd.f32 %v650_v51, %v642_v50  ;;  %v801_v50 = vld [vmem:[#allocation2 + $0xe] sm:$0x3] }
 0xb03   :  { %v802_v51 = vadd.f32 %v801_v50, %v1194_v41 }
 0xb04   :  { %947 = vtanh.f32 %v652_v52 }
 0xb0a   :  { %v948_v53 = vpop.eup %947 }
 0xb0b   :  { %655 = vrot.lane.b32.xlu0 %v948_v53, %s973_s0 }
 0xb7d   :  { %v656_v54 = vpop.permute.xlu0 %655 }
 0xb7e   :  { %v658_v55 = vmul.f32 %v656_v54, %v639_v48 }
 0xb80   :  { %660 = vrot.lane.b32.xlu1 %v658_v55, %s974_s6 }
 0xbf2   :  { %v661_v56 = vpop.permute.xlu1 %660 }
 0xbf3   :  { %898 = vst.msk [vmem:[%s1284_s9 + $0x8] sm:$0x3] %vm391_vm7, %v661_v56  ;;  %899 = vmatmul.msk.f32.vlgmr.msra.gmra.mxu1 %vm105_vm0, %v661_v56 }
 0xc70   :  { %v686_v59 = vpop.f32.mrf.mxu1 }
 0xc71   :  { %v689_v60 = vadd.f32 %v686_v59, %v666_v58 }
 0xc73   :  { %949 = vtanh.f32 %v689_v60  ;;  %v690_v62 = vsub.f32 0.0, %v689_v60 }
 0xc75   :  { %v691_v63 = vmul.f32 1.442695, %v690_v62 }
 0xc77   :  { %951 = vpow2.f32 %v691_v63 }
 0xc79   :  { %v950_v61 = vpop.eup %949 }
 0xc7a   :  { %712 = vrot.lane.b32.xlu2 %v950_v61, %s973_s0 }
 0xc7d   :  { %v952_v0 = vpop.eup %951 }
 0xc7e   :  { %v693_v1 = vadd.f32 1.0, %v952_v0 }
 0xc80   :  { %953 = vrcp.f32 %v693_v1  ;;  %v705_v7 = vand.u32 2147483648, %v693_v1  ;;  %vm699_vm11 = vweird.f32 %v693_v1  ;;  %v703_v8 = vand.u32 2147483647, %v693_v1 }
 0xc82   :  { %v706_v10 = vor.u32 1.1754944e-38, %v705_v7  ;;  %vm704_vm13 = vcmp.eq.f32.partialorder %v703_v8, 8.507059e+37 }
 0xc86   :  { %v954_v2 = vpop.eup %953 }
 0xc87   :  { %v695_v3 = vmul.f32 %v954_v2, %v693_v1  ;;  %vm700_vm10 = vweird.f32 %v954_v2 }
 0xc88   :  { %vm701_vm12 = vmor %vm699_vm11, %vm700_vm10 }
 0xc89   :  { %v696_v4 = vsub.f32 1.0, %v695_v3 }
 0xc8b   :  { %v697_v5 = vmul.f32 %v954_v2, %v696_v4 }
 0xc8d   :  { %v698_v6 = vadd.f32 %v954_v2, %v697_v5 }
 0xc8f   :  { %v702_v9 = vsel %vm701_vm12, %v954_v2, %v698_v6 }
 0xc90   :  { %v707_v12 = vsel %vm704_vm13, %v706_v10, %v702_v9 }
 0xc91   :  { %v710_v14 = vmul.f32 %v707_v12, %v652_v52 }
 0xcd4   :  { %v713_v11 = vpop.permute.xlu2 %712 }
 0xcd5   :  { %v715_v13 = vmul.f32 %v713_v11, %v707_v12 }
 0xcd7   :  { %717 = vrot.lane.b32.xlu0 %v715_v13, %s974_s6 }
 0xd49   :  { %v718_v15 = vpop.permute.xlu0 %717 }
 0xd4a   :  { %v720_v16 = vadd.f32 %v718_v15, %v710_v14 }
 0xd4c   :  { %955 = vtanh.f32 %v720_v16 }
 0xd52   :  { %v956_v17 = vpop.eup %955 }
 0xd53   :  { %723 = vrot.lane.b32.xlu1 %v956_v17, %s973_s0 }
 0xdc5   :  { %v724_v18 = vpop.permute.xlu1 %723 }
 0xdc6   :  { %v726_v19 = vmul.f32 %v724_v18, %v707_v12 }
 0xdc8   :  { %728 = vrot.lane.b32.xlu2 %v726_v19, %s974_s6 }
 0xe22   :  { %v729_v20 = vpop.permute.xlu2 %728 }
 0xe23   :  { %900 = vst.msk [vmem:[%s1284_s9 + $0xa] sm:$0x3] %vm391_vm7, %v729_v20  ;;  %901 = vmatmul.msk.f32.vlgmr.msrb.gmra.mxu0 %vm105_vm0, %v729_v20 }
 0xea0   :  { %v754_v23 = vpop.f32.mrf.mxu0 }
 0xea1   :  { %v757_v24 = vadd.f32 %v754_v23, %v734_v22 }
 0xea3   :  { %957 = vtanh.f32 %v757_v24  ;;  %v758_v26 = vsub.f32 0.0, %v757_v24 }
 0xea5   :  { %v759_v27 = vmul.f32 1.442695, %v758_v26 }
 0xea7   :  { %959 = vpow2.f32 %v759_v27 }
 0xea9   :  { %v958_v25 = vpop.eup %957 }
 0xeaa   :  { %780 = vrot.lane.b32.xlu0 %v958_v25, %s973_s0 }
 0xead   :  { %v960_v28 = vpop.eup %959 }
 0xeae   :  { %v761_v29 = vadd.f32 1.0, %v960_v28 }
 0xeb0   :  { %961 = vrcp.f32 %v761_v29  ;;  %v773_v35 = vand.u32 2147483648, %v761_v29  ;;  %vm767_vm15 = vweird.f32 %v761_v29  ;;  %v771_v36 = vand.u32 2147483647, %v761_v29 }
 0xeb2   :  { %v774_v38 = vor.u32 1.1754944e-38, %v773_v35  ;;  %vm772_vm2 = vcmp.eq.f32.partialorder %v771_v36, 8.507059e+37 }
 0xeb6   :  { %v962_v30 = vpop.eup %961 }
 0xeb7   :  { %v763_v31 = vmul.f32 %v962_v30, %v761_v29  ;;  %vm768_vm14 = vweird.f32 %v962_v30 }
 0xeb8   :  { %vm769_vm1 = vmor %vm767_vm15, %vm768_vm14 }
 0xeb9   :  { %v764_v32 = vsub.f32 1.0, %v763_v31 }
 0xebb   :  { %v765_v33 = vmul.f32 %v962_v30, %v764_v32 }
 0xebd   :  { %v766_v34 = vadd.f32 %v962_v30, %v765_v33 }
 0xebf   :  { %v770_v37 = vsel %vm769_vm1, %v962_v30, %v766_v34 }
 0xec0   :  { %v775_v40 = vsel %vm772_vm2, %v774_v38, %v770_v37 }
 0xec1   :  { %v778_v43 = vmul.f32 %v775_v40, %v720_v16 }
 0xf1c   :  { %v781_v39 = vpop.permute.xlu0 %780 }
 0xf1d   :  { %v783_v42 = vmul.f32 %v781_v39, %v775_v40 }
 0xf1f   :  { %785 = vrot.lane.b32.xlu1 %v783_v42, %s974_s6 }
 0xf91   :  { %v786_v44 = vpop.permute.xlu1 %785 }
 0xf92   :  { %v788_v45 = vadd.f32 %v786_v44, %v778_v43 }
 0xf94   :  { %963 = vtanh.f32 %v788_v45 }
 0xf9a   :  { %v964_v46 = vpop.eup %963 }
 0xf9b   :  { %791 = vrot.lane.b32.xlu2 %v964_v46, %s973_s0 }
 0xff5   :  { %v792_v47 = vpop.permute.xlu2 %791 }
 0xff6   :  { %v794_v48 = vmul.f32 %v792_v47, %v775_v40 }
 0xff8   :  { %796 = vrot.lane.b32.xlu0 %v794_v48, %s974_s6 }
0x106a   :  { %v797_v49 = vpop.permute.xlu0 %796 }
0x106b   :  { %902 = vst.msk [vmem:[%s1284_s9 + $0xc] sm:$0x3] %vm391_vm7, %v797_v49  ;;  %903 = vmatmul.msk.f32.vlgmr.msra.gmra.mxu2 %vm105_vm0, %v797_v49 }
0x10ee   :  { %v822_v52 = vpop.f32.mrf.mxu2 }
0x10ef   :  { %v825_v53 = vadd.f32 %v822_v52, %v802_v51 }
0x10f1   :  { %965 = vtanh.f32 %v825_v53  ;;  %v826_v55 = vsub.f32 0.0, %v825_v53 }
0x10f3   :  { %v827_v56 = vmul.f32 1.442695, %v826_v55 }
0x10f5   :  { %967 = vpow2.f32 %v827_v56 }
0x10f7   :  { %v966_v54 = vpop.eup %965 }
0x10f8   :  { %848 = vrot.lane.b32.xlu1 %v966_v54, %s973_s0 }
0x10fb   :  { %v968_v57 = vpop.eup %967 }
0x10fc   :  { %v829_v58 = vadd.f32 1.0, %v968_v57 }
0x10fe   :  { %969 = vrcp.f32 %v829_v58  ;;  %v841_v0 = vand.u32 2147483648, %v829_v58  ;;  %vm835_vm3 = vweird.f32 %v829_v58  ;;  %v839_v41 = vand.u32 2147483647, %v829_v58 }
0x1100   :  { %v842_v2 = vor.u32 1.1754944e-38, %v841_v0  ;;  %vm840_vm5 = vcmp.eq.f32.partialorder %v839_v41, 8.507059e+37 }
0x1104   :  { %v970_v59 = vpop.eup %969 }
0x1105   :  { %v831_v60 = vmul.f32 %v970_v59, %v829_v58  ;;  %vm836_vm0 = vweird.f32 %v970_v59 }
0x1106   :  { %vm837_vm4 = vmor %vm835_vm3, %vm836_vm0 }
0x1107   :  { %v832_v61 = vsub.f32 1.0, %v831_v60 }
0x1109   :  { %v833_v62 = vmul.f32 %v970_v59, %v832_v61 }
0x110b   :  { %v834_v63 = vadd.f32 %v970_v59, %v833_v62 }
0x110d   :  { %v838_v1 = vsel %vm837_vm4, %v970_v59, %v834_v63 }
0x110e   :  { %v843_v4 = vsel %vm840_vm5, %v842_v2, %v838_v1 }
0x110f   :  { %v846_v6 = vmul.f32 %v843_v4, %v788_v45 }
0x116a   :  { %v849_v3 = vpop.permute.xlu1 %848 }
0x116b   :  { %v851_v5 = vmul.f32 %v849_v3, %v843_v4 }
0x116d   :  { %853 = vrot.lane.b32.xlu2 %v851_v5, %s974_s6 }
0x11c7   :  { %v854_v7 = vpop.permute.xlu2 %853 }
0x11c8   :  { %v856_v8 = vadd.f32 %v854_v7, %v846_v6 }
0x11ca   :  { %971 = vtanh.f32 %v856_v8 }
0x11d0   :  { %v972_v9 = vpop.eup %971 }
0x11d1   :  { %859 = vrot.lane.b32.xlu0 %v972_v9, %s973_s0 }
0x1243   :  { %v860_v10 = vpop.permute.xlu0 %859 }
0x1244   :  { %v862_v11 = vmul.f32 %v860_v10, %v843_v4 }
0x1246   :  { %864 = vrot.lane.b32.xlu1 %v862_v11, %s974_s6 }
0x12b8   :  { %v865_v12 = vpop.permute.xlu1 %864 }
0x12b9   :  { %904 = vst.msk [vmem:[%s1284_s9 + $0xe] sm:$0x3] %vm391_vm7, %v865_v12 }

</bundles_post_ra>
